<compile_context>
chip_gen: v5e
topology: v5e:2x2
jax: 0.10.0
libtpu: 0.0.40
codegen_flags: <defaults>
</compile_context>

<pallas_src>
import jax
import jax.numpy as jnp
from jax import lax
from jax.experimental import pallas as pl
from jax.experimental.pallas import tpu as pltpu
import numpy as np


def _fused_kernel(xm_ref, xh_ref, wdw_ref, s1_ref, b1_ref, wpw_ref, s2_ref, b2_ref, o_ref):
    # xm_ref : (1, 4, th, Cin, Wq)  main rows of the parity-split padded input
    # xh_ref : (1, 4, 1,  Cin, Wq)  one halo row (parity-plane row (t+1)*th)
    # wdw_ref: (9, Cin, 1)          depthwise taps, row k = kh*3 + kw
    # s1_ref, b1_ref: (Cin, 1)      folded BN1 scale / bias
    # wpw_ref: (Cin, Cout)          pointwise (1x1) conv weights
    # s2_ref, b2_ref: (1, Cout)     folded BN2 scale / bias
    # o_ref  : (1, th, Wo, Cout)    pooled output rows for this (batch, row-tile)
    _, _, th, Cin, Wq = xm_ref.shape
    Wo = Wq - 1
    Cout = o_ref.shape[3]
    P = th * Wo

    # All 4 parity planes with the 1-row halo appended: (4, th+1, Cin, Wq).
    xall = jnp.concatenate([xm_ref[0], xh_ref[0]], axis=1)

    w_all = wdw_ref[...]          # (9, Cin, 1)
    s1 = s1_ref[...]              # (Cin, 1)
    b1 = b1_ref[...]              # (Cin, 1)

    # Depthwise 3x3 conv + BN1 + ReLU, one accumulator per 2x2 pool member (di, dj).
    # Input column/row parity is handled by the wrapper-side split, so every slice below
    # is a static offset of 0/1 on the untiled row axis (free) or the lane axis (cheap).
    ys = []
    for di in (0, 1):
        for dj in (0, 1):
            acc = jnp.zeros((th, Cin, Wo), jnp.float32)
            for kh in range(3):
                a, pr = (di + kh) // 2, (di + kh) % 2
                for kw in range(3):
                    bo, pc = (dj + kw) // 2, (dj + kw) % 2
                    g_in = 2 * pr + pc
                    patch = xall[g_in, a:a + th, :, bo:bo + Wo]        # (th, Cin, Wo)
                    acc = acc + patch * w_all[kh * 3 + kw]             # (Cin,1) bcast
            ys.append(jnp.maximum(acc * s1 + b1, 0.0))

    # Single pointwise matmul over all 4 pool members x all spatial positions.
    ycat = jnp.concatenate(ys, axis=0)            # (4*th, Cin, Wo), pool-group major
    yt = jnp.transpose(ycat, (0, 2, 1))           # (4*th, Wo, Cin)   minor-dims swap
    y2 = yt.reshape(4 * P, Cin)                   # row = g*P + i*Wo + j
    z = jnp.dot(y2, wpw_ref[...], preferred_element_type=jnp.float32)  # (4*P, Cout)
    z = jnp.maximum(z * s2_ref[...] + b2_ref[...], 0.0)                # BN2 + ReLU

    # 2x2 max-pool == max over the 4 contiguous pool-member blocks (aligned row slices).
    pooled = jnp.maximum(jnp.maximum(z[0:P], z[P:2 * P]),
                         jnp.maximum(z[2 * P:3 * P], z[3 * P:4 * P]))  # (P, Cout)
    o_ref[0] = pooled.reshape(th, Wo, Cout)


def conv2d_dw_forward(x, params, eps=1e-5, pooled_rows_per_tile=4):
    """x: (B, Cin, H, W) float32 (PyTorch NCHW). Returns (B, Cout, H//2, W//2)."""
    B, Cin, H, W = x.shape
    assert H % 2 == 0 and W % 2 == 0, "MaxPool2d(2) path assumes even H and W"
    wdw = params["dw_weight"]            # (Cin, 1, 3, 3)  torch depthwise layout
    wpw = params["pw_weight"]            # (Cout, Cin, 1, 1)
    Cout = wpw.shape[0]
    Ho, Wo = H // 2, W // 2
    Hq, Wq = Ho + 1, Wo + 1              # parity-plane extents of the padded image

    th = pooled_rows_per_tile
    if Ho % th != 0:
        th = Ho                          # fallback: one row-tile per batch element
    T = Ho // th

    # Fold BatchNorm (eval mode) into per-channel scale/bias.
    s1 = params["bn1_gamma"] / jnp.sqrt(params["bn1_var"] + eps)
    b1 = params["bn1_beta"] - params["bn1_mean"] * s1
    s2 = params["bn2_gamma"] / jnp.sqrt(params["bn2_var"] + eps)
    b2 = params["bn2_beta"] - params["bn2_mean"] * s2

    # Pad spatially (padding = 1 for the 3x3 depthwise conv) and split the padded image
    # into its 4 (row, col) parity planes: p4[b, 2*pr+pc, rq, c, sq] = xp[b, c, 2rq+pr, 2sq+pc].
    xp = jnp.pad(x, ((0, 0), (0, 0), (1, 1), (1, 1)))
    p4 = xp.reshape(B, Cin, Hq, 2, Wq, 2)
    p4 = jnp.transpose(p4, (0, 3, 5, 2, 1, 4)).reshape(B, 4, Hq, Cin, Wq)

    # Compact parameter tiles.
    w_dw = jnp.transpose(wdw[:, 0].reshape(Cin, 9), (1, 0)).reshape(9, Cin, 1)  # (9,Cin,1)
    w_pw = jnp.transpose(wpw[:, :, 0, 0], (1, 0))                               # (Cin,Cout)

    out_nhwc = pl.pallas_call(
        _fused_kernel,
        out_shape=jax.ShapeDtypeStruct((B, Ho, Wo, Cout), jnp.float32),
        grid=(B, T),
        in_specs=[
            # main rows of this tile (parity-plane rows [t*th, t*th+th))
            pl.BlockSpec((1, 4, th, Cin, Wq), lambda b, t: (b, 0, t, 0, 0)),
            # 1-row halo (parity-plane row (t+1)*th); block size 1 => block idx == row idx
            pl.BlockSpec((1, 4, 1, Cin, Wq), lambda b, t: (b, 0, (t + 1) * th, 0, 0)),
            pl.BlockSpec((9, Cin, 1), lambda b, t: (0, 0, 0)),
            pl.BlockSpec((Cin, 1), lambda b, t: (0, 0)),
            pl.BlockSpec((Cin, 1), lambda b, t: (0, 0)),
            pl.BlockSpec((Cin, Cout), lambda b, t: (0, 0)),
            pl.BlockSpec((1, Cout), lambda b, t: (0, 0)),
            pl.BlockSpec((1, Cout), lambda b, t: (0, 0)),
        ],
        out_specs=pl.BlockSpec((1, th, Wo, Cout), lambda b, t: (b, t, 0, 0)),
        compiler_params=pltpu.CompilerParams(
            dimension_semantics=("parallel", "parallel"),
            vmem_limit_bytes=32 * 1024 * 1024,
        ),
    )(p4, p4, w_dw, s1.reshape(Cin, 1), b1.reshape(Cin, 1),
      w_pw, s2.reshape(1, Cout), b2.reshape(1, Cout))

    # Pooled output is small; one cheap transpose back to PyTorch NCHW.
    return jnp.transpose(out_nhwc, (0, 3, 1, 2))


def reference_forward(x, params, eps=1e-5):
    """Pure-JAX reference matching the PyTorch module (BN in eval mode)."""
    wdw = params["dw_weight"]
    wpw = params["pw_weight"]
    Cin = x.shape[1]
    out = lax.conv_general_dilated(
        x, wdw, window_strides=(1, 1), padding=((1, 1), (1, 1)),
        dimension_numbers=("NCHW", "OIHW", "NCHW"), feature_group_count=Cin)
    s1 = params["bn1_gamma"] / jnp.sqrt(params["bn1_var"] + eps)
    b1 = params["bn1_beta"] - params["bn1_mean"] * s1
    out = jnp.maximum(out * s1[None, :, None, None] + b1[None, :, None, None], 0.0)
    out = lax.conv_general_dilated(
        out, wpw, window_strides=(1, 1), padding="VALID",
        dimension_numbers=("NCHW", "OIHW", "NCHW"))
    s2 = params["bn2_gamma"] / jnp.sqrt(params["bn2_var"] + eps)
    b2 = params["bn2_beta"] - params["bn2_mean"] * s2
    out = jnp.maximum(out * s2[None, :, None, None] + b2[None, :, None, None], 0.0)
    B, C, H, W = out.shape
    out = out.reshape(B, C, H // 2, 2, W // 2, 2).max(axis=(3, 5))
    return out


if __name__ == "__main__":
    B, Cin, Cout, H, W = 2, 4, 8, 16, 16

    key = jax.random.PRNGKey(0)
    ks = jax.random.split(key, 11)
    params = {
        "dw_weight": jax.random.normal(ks[0], (Cin, 1, 3, 3), jnp.float32) * 0.2,
        "pw_weight": jax.random.normal(ks[1], (Cout, Cin, 1, 1), jnp.float32) * 0.2,
        "bn1_gamma": jax.random.uniform(ks[2], (Cin,), jnp.float32, 0.5, 1.5),
        "bn1_beta": jax.random.normal(ks[3], (Cin,), jnp.float32) * 0.1,
        "bn1_mean": jax.random.normal(ks[4], (Cin,), jnp.float32) * 0.1,
        "bn1_var": jax.random.uniform(ks[5], (Cin,), jnp.float32, 0.5, 1.5),
        "bn2_gamma": jax.random.uniform(ks[6], (Cout,), jnp.float32, 0.5, 1.5),
        "bn2_beta": jax.random.normal(ks[7], (Cout,), jnp.float32) * 0.1,
        "bn2_mean": jax.random.normal(ks[8], (Cout,), jnp.float32) * 0.1,
        "bn2_var": jax.random.uniform(ks[9], (Cout,), jnp.float32, 0.5, 1.5),
    }
    x = jax.random.normal(ks[10], (B, Cin, H, W), jnp.float32)

    out = conv2d_dw_forward(x, params)
    out = jax.block_until_ready(out)

    ref = jax.block_until_ready(reference_forward(x, params))
    assert out.shape == (B, Cout, H // 2, W // 2), out.shape
    np.testing.assert_allclose(np.asarray(out), np.asarray(ref), rtol=1e-4, atol=1e-5)

    print("KERNEL_OK")
</pallas_src>

<mosaic_0001>
module attributes {stable_mosaic.version = 11 : i64} {
  func.func @_fused_kernel(%arg0: i32, %arg1: i32, %arg2: memref<1x4x4x4x9xf32, #tpu.memory_space<vmem>>, %arg3: memref<1x4x1x4x9xf32, #tpu.memory_space<vmem>>, %arg4: memref<9x4x1xf32, #tpu.memory_space<vmem>>, %arg5: memref<4x1xf32, #tpu.memory_space<vmem>>, %arg6: memref<4x1xf32, #tpu.memory_space<vmem>>, %arg7: memref<4x8xf32, #tpu.memory_space<vmem>>, %arg8: memref<1x8xf32, #tpu.memory_space<vmem>>, %arg9: memref<1x8xf32, #tpu.memory_space<vmem>>, %arg10: memref<1x4x8x8xf32, #tpu.memory_space<vmem>>) attributes {dimension_semantics = [#tpu.dimension_semantics<parallel>, #tpu.dimension_semantics<parallel>], iteration_bounds = array<i64: 2, 2>, scalar_prefetch = 0 : i64, scratch_operands = 0 : i64, tpu.core_type = #tpu.core_type<tc>, window_params = [{transform_indices = @transform_0, window_bounds = array<i64: 1, 4, 4, 4, 9>}, {transform_indices = @transform_1, window_bounds = array<i64: 1, 4, 1, 4, 9>}, {pipeline_mode = #tpu.pipeline_mode<synchronous>, transform_indices = @transform_2, window_bounds = array<i64: 9, 4, 1>}, {pipeline_mode = #tpu.pipeline_mode<synchronous>, transform_indices = @transform_3, window_bounds = array<i64: 4, 1>}, {pipeline_mode = #tpu.pipeline_mode<synchronous>, transform_indices = @transform_4, window_bounds = array<i64: 4, 1>}, {pipeline_mode = #tpu.pipeline_mode<synchronous>, transform_indices = @transform_5, window_bounds = array<i64: 4, 8>}, {pipeline_mode = #tpu.pipeline_mode<synchronous>, transform_indices = @transform_6, window_bounds = array<i64: 1, 8>}, {pipeline_mode = #tpu.pipeline_mode<synchronous>, transform_indices = @transform_7, window_bounds = array<i64: 1, 8>}, {transform_indices = @transform_8, window_bounds = array<i64: 1, 4, 8, 8>}]} {
    %c0 = arith.constant 0 : index
    %c0_0 = arith.constant 0 : index
    %c0_1 = arith.constant 0 : index
    %c0_2 = arith.constant 0 : index
    %c0_3 = arith.constant 0 : index
    %0 = vector.load %arg2[%c0, %c0_0, %c0_1, %c0_2, %c0_3] : memref<1x4x4x4x9xf32, #tpu.memory_space<vmem>>, vector<1x4x4x4x9xf32>
    %1 = vector.shape_cast %0 : vector<1x4x4x4x9xf32> to vector<4x4x4x9xf32>
    %c0_4 = arith.constant 0 : index
    %c0_5 = arith.constant 0 : index
    %c0_6 = arith.constant 0 : index
    %c0_7 = arith.constant 0 : index
    %c0_8 = arith.constant 0 : index
    %2 = vector.load %arg3[%c0_4, %c0_5, %c0_6, %c0_7, %c0_8] : memref<1x4x1x4x9xf32, #tpu.memory_space<vmem>>, vector<1x4x1x4x9xf32>
    %3 = vector.shape_cast %2 : vector<1x4x1x4x9xf32> to vector<4x1x4x9xf32>
    %4 = tpu.concatenate %1, %3 in 1 : vector<4x4x4x9xf32>, vector<4x1x4x9xf32> -> vector<4x5x4x9xf32>
    %c0_9 = arith.constant 0 : index
    %c0_10 = arith.constant 0 : index
    %c0_11 = arith.constant 0 : index
    %5 = vector.load %arg4[%c0_9, %c0_10, %c0_11] : memref<9x4x1xf32, #tpu.memory_space<vmem>>, vector<9x4x1xf32>
    %c0_12 = arith.constant 0 : index
    %c0_13 = arith.constant 0 : index
    %6 = vector.load %arg5[%c0_12, %c0_13] : memref<4x1xf32, #tpu.memory_space<vmem>>, vector<4x1xf32>
    %c0_14 = arith.constant 0 : index
    %c0_15 = arith.constant 0 : index
    %7 = vector.load %arg6[%c0_14, %c0_15] : memref<4x1xf32, #tpu.memory_space<vmem>>, vector<4x1xf32>
    %cst = arith.constant 0.000000e+00 : f32
    %8 = vector.broadcast %cst : f32 to vector<4x4x8xf32>
    %9 = vector.extract_strided_slice %4 {offsets = [0, 0, 0, 0], sizes = [1, 4, 4, 8], strides = [1, 1, 1, 1]} : vector<4x5x4x9xf32> to vector<1x4x4x8xf32>
    %10 = vector.shape_cast %9 : vector<1x4x4x8xf32> to vector<4x4x8xf32>
    %11 = vector.extract_strided_slice %5 {offsets = [0, 0, 0], sizes = [1, 4, 1], strides = [1, 1, 1]} : vector<9x4x1xf32> to vector<1x4x1xf32>
    %12 = vector.shape_cast %11 : vector<1x4x1xf32> to vector<4x1xf32>
    %13 = vector.shape_cast %12 : vector<4x1xf32> to vector<1x4x1xf32>
    %14 = vector.broadcast %13 : vector<1x4x1xf32> to vector<4x4x8xf32>
    %15 = arith.mulf %10, %14 : vector<4x4x8xf32>
    %16 = arith.addf %8, %15 : vector<4x4x8xf32>
    %17 = vector.extract_strided_slice %4 {offsets = [1, 0, 0, 0], sizes = [1, 4, 4, 8], strides = [1, 1, 1, 1]} : vector<4x5x4x9xf32> to vector<1x4x4x8xf32>
    %18 = vector.shape_cast %17 : vector<1x4x4x8xf32> to vector<4x4x8xf32>
    %19 = vector.extract_strided_slice %5 {offsets = [1, 0, 0], sizes = [1, 4, 1], strides = [1, 1, 1]} : vector<9x4x1xf32> to vector<1x4x1xf32>
    %20 = vector.shape_cast %19 : vector<1x4x1xf32> to vector<4x1xf32>
    %21 = vector.shape_cast %20 : vector<4x1xf32> to vector<1x4x1xf32>
    %22 = vector.broadcast %21 : vector<1x4x1xf32> to vector<4x4x8xf32>
    %23 = arith.mulf %18, %22 : vector<4x4x8xf32>
    %24 = arith.addf %16, %23 : vector<4x4x8xf32>
    %25 = vector.extract_strided_slice %4 {offsets = [0, 0, 0, 1], sizes = [1, 4, 4, 8], strides = [1, 1, 1, 1]} : vector<4x5x4x9xf32> to vector<1x4x4x8xf32>
    %26 = vector.shape_cast %25 : vector<1x4x4x8xf32> to vector<4x4x8xf32>
    %27 = vector.extract_strided_slice %5 {offsets = [2, 0, 0], sizes = [1, 4, 1], strides = [1, 1, 1]} : vector<9x4x1xf32> to vector<1x4x1xf32>
    %28 = vector.shape_cast %27 : vector<1x4x1xf32> to vector<4x1xf32>
    %29 = vector.shape_cast %28 : vector<4x1xf32> to vector<1x4x1xf32>
    %30 = vector.broadcast %29 : vector<1x4x1xf32> to vector<4x4x8xf32>
    %31 = arith.mulf %26, %30 : vector<4x4x8xf32>
    %32 = arith.addf %24, %31 : vector<4x4x8xf32>
    %33 = vector.extract_strided_slice %4 {offsets = [2, 0, 0, 0], sizes = [1, 4, 4, 8], strides = [1, 1, 1, 1]} : vector<4x5x4x9xf32> to vector<1x4x4x8xf32>
    %34 = vector.shape_cast %33 : vector<1x4x4x8xf32> to vector<4x4x8xf32>
    %35 = vector.extract_strided_slice %5 {offsets = [3, 0, 0], sizes = [1, 4, 1], strides = [1, 1, 1]} : vector<9x4x1xf32> to vector<1x4x1xf32>
    %36 = vector.shape_cast %35 : vector<1x4x1xf32> to vector<4x1xf32>
    %37 = vector.shape_cast %36 : vector<4x1xf32> to vector<1x4x1xf32>
    %38 = vector.broadcast %37 : vector<1x4x1xf32> to vector<4x4x8xf32>
    %39 = arith.mulf %34, %38 : vector<4x4x8xf32>
    %40 = arith.addf %32, %39 : vector<4x4x8xf32>
    %41 = vector.extract_strided_slice %4 {offsets = [3, 0, 0, 0], sizes = [1, 4, 4, 8], strides = [1, 1, 1, 1]} : vector<4x5x4x9xf32> to vector<1x4x4x8xf32>
    %42 = vector.shape_cast %41 : vector<1x4x4x8xf32> to vector<4x4x8xf32>
    %43 = vector.extract_strided_slice %5 {offsets = [4, 0, 0], sizes = [1, 4, 1], strides = [1, 1, 1]} : vector<9x4x1xf32> to vector<1x4x1xf32>
    %44 = vector.shape_cast %43 : vector<1x4x1xf32> to vector<4x1xf32>
    %45 = vector.shape_cast %44 : vector<4x1xf32> to vector<1x4x1xf32>
    %46 = vector.broadcast %45 : vector<1x4x1xf32> to vector<4x4x8xf32>
    %47 = arith.mulf %42, %46 : vector<4x4x8xf32>
    %48 = arith.addf %40, %47 : vector<4x4x8xf32>
    %49 = vector.extract_strided_slice %4 {offsets = [2, 0, 0, 1], sizes = [1, 4, 4, 8], strides = [1, 1, 1, 1]} : vector<4x5x4x9xf32> to vector<1x4x4x8xf32>
    %50 = vector.shape_cast %49 : vector<1x4x4x8xf32> to vector<4x4x8xf32>
    %51 = vector.extract_strided_slice %5 {offsets = [5, 0, 0], sizes = [1, 4, 1], strides = [1, 1, 1]} : vector<9x4x1xf32> to vector<1x4x1xf32>
    %52 = vector.shape_cast %51 : vector<1x4x1xf32> to vector<4x1xf32>
    %53 = vector.shape_cast %52 : vector<4x1xf32> to vector<1x4x1xf32>
    %54 = vector.broadcast %53 : vector<1x4x1xf32> to vector<4x4x8xf32>
    %55 = arith.mulf %50, %54 : vector<4x4x8xf32>
    %56 = arith.addf %48, %55 : vector<4x4x8xf32>
    %57 = vector.extract_strided_slice %4 {offsets = [0, 1, 0, 0], sizes = [1, 4, 4, 8], strides = [1, 1, 1, 1]} : vector<4x5x4x9xf32> to vector<1x4x4x8xf32>
    %58 = vector.shape_cast %57 : vector<1x4x4x8xf32> to vector<4x4x8xf32>
    %59 = vector.extract_strided_slice %5 {offsets = [6, 0, 0], sizes = [1, 4, 1], strides = [1, 1, 1]} : vector<9x4x1xf32> to vector<1x4x1xf32>
    %60 = vector.shape_cast %59 : vector<1x4x1xf32> to vector<4x1xf32>
    %61 = vector.shape_cast %60 : vector<4x1xf32> to vector<1x4x1xf32>
    %62 = vector.broadcast %61 : vector<1x4x1xf32> to vector<4x4x8xf32>
    %63 = arith.mulf %58, %62 : vector<4x4x8xf32>
    %64 = arith.addf %56, %63 : vector<4x4x8xf32>
    %65 = vector.extract_strided_slice %4 {offsets = [1, 1, 0, 0], sizes = [1, 4, 4, 8], strides = [1, 1, 1, 1]} : vector<4x5x4x9xf32> to vector<1x4x4x8xf32>
    %66 = vector.shape_cast %65 : vector<1x4x4x8xf32> to vector<4x4x8xf32>
    %67 = vector.extract_strided_slice %5 {offsets = [7, 0, 0], sizes = [1, 4, 1], strides = [1, 1, 1]} : vector<9x4x1xf32> to vector<1x4x1xf32>
    %68 = vector.shape_cast %67 : vector<1x4x1xf32> to vector<4x1xf32>
    %69 = vector.shape_cast %68 : vector<4x1xf32> to vector<1x4x1xf32>
    %70 = vector.broadcast %69 : vector<1x4x1xf32> to vector<4x4x8xf32>
    %71 = arith.mulf %66, %70 : vector<4x4x8xf32>
    %72 = arith.addf %64, %71 : vector<4x4x8xf32>
    %73 = vector.extract_strided_slice %4 {offsets = [0, 1, 0, 1], sizes = [1, 4, 4, 8], strides = [1, 1, 1, 1]} : vector<4x5x4x9xf32> to vector<1x4x4x8xf32>
    %74 = vector.shape_cast %73 : vector<1x4x4x8xf32> to vector<4x4x8xf32>
    %75 = vector.extract_strided_slice %5 {offsets = [8, 0, 0], sizes = [1, 4, 1], strides = [1, 1, 1]} : vector<9x4x1xf32> to vector<1x4x1xf32>
    %76 = vector.shape_cast %75 : vector<1x4x1xf32> to vector<4x1xf32>
    %77 = vector.shape_cast %76 : vector<4x1xf32> to vector<1x4x1xf32>
    %78 = vector.broadcast %77 : vector<1x4x1xf32> to vector<4x4x8xf32>
    %79 = arith.mulf %74, %78 : vector<4x4x8xf32>
    %80 = arith.addf %72, %79 : vector<4x4x8xf32>
    %81 = vector.shape_cast %6 : vector<4x1xf32> to vector<1x4x1xf32>
    %82 = vector.broadcast %81 : vector<1x4x1xf32> to vector<4x4x8xf32>
    %83 = arith.mulf %80, %82 : vector<4x4x8xf32>
    %84 = vector.shape_cast %7 : vector<4x1xf32> to vector<1x4x1xf32>
    %85 = vector.broadcast %84 : vector<1x4x1xf32> to vector<4x4x8xf32>
    %86 = arith.addf %83, %85 : vector<4x4x8xf32>
    %cst_16 = arith.constant 0.000000e+00 : f32
    %87 = vector.broadcast %cst_16 : f32 to vector<4x4x8xf32>
    %88 = arith.maximumf %86, %87 : vector<4x4x8xf32>
    %cst_17 = arith.constant 0.000000e+00 : f32
    %89 = vector.broadcast %cst_17 : f32 to vector<4x4x8xf32>
    %90 = vector.extract_strided_slice %4 {offsets = [1, 0, 0, 0], sizes = [1, 4, 4, 8], strides = [1, 1, 1, 1]} : vector<4x5x4x9xf32> to vector<1x4x4x8xf32>
    %91 = vector.shape_cast %90 : vector<1x4x4x8xf32> to vector<4x4x8xf32>
    %92 = vector.extract_strided_slice %5 {offsets = [0, 0, 0], sizes = [1, 4, 1], strides = [1, 1, 1]} : vector<9x4x1xf32> to vector<1x4x1xf32>
    %93 = vector.shape_cast %92 : vector<1x4x1xf32> to vector<4x1xf32>
    %94 = vector.shape_cast %93 : vector<4x1xf32> to vector<1x4x1xf32>
    %95 = vector.broadcast %94 : vector<1x4x1xf32> to vector<4x4x8xf32>
    %96 = arith.mulf %91, %95 : vector<4x4x8xf32>
    %97 = arith.addf %89, %96 : vector<4x4x8xf32>
    %98 = vector.extract_strided_slice %4 {offsets = [0, 0, 0, 1], sizes = [1, 4, 4, 8], strides = [1, 1, 1, 1]} : vector<4x5x4x9xf32> to vector<1x4x4x8xf32>
    %99 = vector.shape_cast %98 : vector<1x4x4x8xf32> to vector<4x4x8xf32>
    %100 = vector.extract_strided_slice %5 {offsets = [1, 0, 0], sizes = [1, 4, 1], strides = [1, 1, 1]} : vector<9x4x1xf32> to vector<1x4x1xf32>
    %101 = vector.shape_cast %100 : vector<1x4x1xf32> to vector<4x1xf32>
    %102 = vector.shape_cast %101 : vector<4x1xf32> to vector<1x4x1xf32>
    %103 = vector.broadcast %102 : vector<1x4x1xf32> to vector<4x4x8xf32>
    %104 = arith.mulf %99, %103 : vector<4x4x8xf32>
    %105 = arith.addf %97, %104 : vector<4x4x8xf32>
    %106 = vector.extract_strided_slice %4 {offsets = [1, 0, 0, 1], sizes = [1, 4, 4, 8], strides = [1, 1, 1, 1]} : vector<4x5x4x9xf32> to vector<1x4x4x8xf32>
    %107 = vector.shape_cast %106 : vector<1x4x4x8xf32> to vector<4x4x8xf32>
    %108 = vector.extract_strided_slice %5 {offsets = [2, 0, 0], sizes = [1, 4, 1], strides = [1, 1, 1]} : vector<9x4x1xf32> to vector<1x4x1xf32>
    %109 = vector.shape_cast %108 : vector<1x4x1xf32> to vector<4x1xf32>
    %110 = vector.shape_cast %109 : vector<4x1xf32> to vector<1x4x1xf32>
    %111 = vector.broadcast %110 : vector<1x4x1xf32> to vector<4x4x8xf32>
    %112 = arith.mulf %107, %111 : vector<4x4x8xf32>
    %113 = arith.addf %105, %112 : vector<4x4x8xf32>
    %114 = vector.extract_strided_slice %4 {offsets = [3, 0, 0, 0], sizes = [1, 4, 4, 8], strides = [1, 1, 1, 1]} : vector<4x5x4x9xf32> to vector<1x4x4x8xf32>
    %115 = vector.shape_cast %114 : vector<1x4x4x8xf32> to vector<4x4x8xf32>
    %116 = vector.extract_strided_slice %5 {offsets = [3, 0, 0], sizes = [1, 4, 1], strides = [1, 1, 1]} : vector<9x4x1xf32> to vector<1x4x1xf32>
    %117 = vector.shape_cast %116 : vector<1x4x1xf32> to vector<4x1xf32>
    %118 = vector.shape_cast %117 : vector<4x1xf32> to vector<1x4x1xf32>
    %119 = vector.broadcast %118 : vector<1x4x1xf32> to vector<4x4x8xf32>
    %120 = arith.mulf %115, %119 : vector<4x4x8xf32>
    %121 = arith.addf %113, %120 : vector<4x4x8xf32>
    %122 = vector.extract_strided_slice %4 {offsets = [2, 0, 0, 1], sizes = [1, 4, 4, 8], strides = [1, 1, 1, 1]} : vector<4x5x4x9xf32> to vector<1x4x4x8xf32>
    %123 = vector.shape_cast %122 : vector<1x4x4x8xf32> to vector<4x4x8xf32>
    %124 = vector.extract_strided_slice %5 {offsets = [4, 0, 0], sizes = [1, 4, 1], strides = [1, 1, 1]} : vector<9x4x1xf32> to vector<1x4x1xf32>
    %125 = vector.shape_cast %124 : vector<1x4x1xf32> to vector<4x1xf32>
    %126 = vector.shape_cast %125 : vector<4x1xf32> to vector<1x4x1xf32>
    %127 = vector.broadcast %126 : vector<1x4x1xf32> to vector<4x4x8xf32>
    %128 = arith.mulf %123, %127 : vector<4x4x8xf32>
    %129 = arith.addf %121, %128 : vector<4x4x8xf32>
    %130 = vector.extract_strided_slice %4 {offsets = [3, 0, 0, 1], sizes = [1, 4, 4, 8], strides = [1, 1, 1, 1]} : vector<4x5x4x9xf32> to vector<1x4x4x8xf32>
    %131 = vector.shape_cast %130 : vector<1x4x4x8xf32> to vector<4x4x8xf32>
    %132 = vector.extract_strided_slice %5 {offsets = [5, 0, 0], sizes = [1, 4, 1], strides = [1, 1, 1]} : vector<9x4x1xf32> to vector<1x4x1xf32>
    %133 = vector.shape_cast %132 : vector<1x4x1xf32> to vector<4x1xf32>
    %134 = vector.shape_cast %133 : vector<4x1xf32> to vector<1x4x1xf32>
    %135 = vector.broadcast %134 : vector<1x4x1xf32> to vector<4x4x8xf32>
    %136 = arith.mulf %131, %135 : vector<4x4x8xf32>
    %137 = arith.addf %129, %136 : vector<4x4x8xf32>
    %138 = vector.extract_strided_slice %4 {offsets = [1, 1, 0, 0], sizes = [1, 4, 4, 8], strides = [1, 1, 1, 1]} : vector<4x5x4x9xf32> to vector<1x4x4x8xf32>
    %139 = vector.shape_cast %138 : vector<1x4x4x8xf32> to vector<4x4x8xf32>
    %140 = vector.extract_strided_slice %5 {offsets = [6, 0, 0], sizes = [1, 4, 1], strides = [1, 1, 1]} : vector<9x4x1xf32> to vector<1x4x1xf32>
    %141 = vector.shape_cast %140 : vector<1x4x1xf32> to vector<4x1xf32>
    %142 = vector.shape_cast %141 : vector<4x1xf32> to vector<1x4x1xf32>
    %143 = vector.broadcast %142 : vector<1x4x1xf32> to vector<4x4x8xf32>
    %144 = arith.mulf %139, %143 : vector<4x4x8xf32>
    %145 = arith.addf %137, %144 : vector<4x4x8xf32>
    %146 = vector.extract_strided_slice %4 {offsets = [0, 1, 0, 1], sizes = [1, 4, 4, 8], strides = [1, 1, 1, 1]} : vector<4x5x4x9xf32> to vector<1x4x4x8xf32>
    %147 = vector.shape_cast %146 : vector<1x4x4x8xf32> to vector<4x4x8xf32>
    %148 = vector.extract_strided_slice %5 {offsets = [7, 0, 0], sizes = [1, 4, 1], strides = [1, 1, 1]} : vector<9x4x1xf32> to vector<1x4x1xf32>
    %149 = vector.shape_cast %148 : vector<1x4x1xf32> to vector<4x1xf32>
    %150 = vector.shape_cast %149 : vector<4x1xf32> to vector<1x4x1xf32>
    %151 = vector.broadcast %150 : vector<1x4x1xf32> to vector<4x4x8xf32>
    %152 = arith.mulf %147, %151 : vector<4x4x8xf32>
    %153 = arith.addf %145, %152 : vector<4x4x8xf32>
    %154 = vector.extract_strided_slice %4 {offsets = [1, 1, 0, 1], sizes = [1, 4, 4, 8], strides = [1, 1, 1, 1]} : vector<4x5x4x9xf32> to vector<1x4x4x8xf32>
    %155 = vector.shape_cast %154 : vector<1x4x4x8xf32> to vector<4x4x8xf32>
    %156 = vector.extract_strided_slice %5 {offsets = [8, 0, 0], sizes = [1, 4, 1], strides = [1, 1, 1]} : vector<9x4x1xf32> to vector<1x4x1xf32>
    %157 = vector.shape_cast %156 : vector<1x4x1xf32> to vector<4x1xf32>
    %158 = vector.shape_cast %157 : vector<4x1xf32> to vector<1x4x1xf32>
    %159 = vector.broadcast %158 : vector<1x4x1xf32> to vector<4x4x8xf32>
    %160 = arith.mulf %155, %159 : vector<4x4x8xf32>
    %161 = arith.addf %153, %160 : vector<4x4x8xf32>
    %162 = vector.shape_cast %6 : vector<4x1xf32> to vector<1x4x1xf32>
    %163 = vector.broadcast %162 : vector<1x4x1xf32> to vector<4x4x8xf32>
    %164 = arith.mulf %161, %163 : vector<4x4x8xf32>
    %165 = vector.shape_cast %7 : vector<4x1xf32> to vector<1x4x1xf32>
    %166 = vector.broadcast %165 : vector<1x4x1xf32> to vector<4x4x8xf32>
    %167 = arith.addf %164, %166 : vector<4x4x8xf32>
    %cst_18 = arith.constant 0.000000e+00 : f32
    %168 = vector.broadcast %cst_18 : f32 to vector<4x4x8xf32>
    %169 = arith.maximumf %167, %168 : vector<4x4x8xf32>
    %cst_19 = arith.constant 0.000000e+00 : f32
    %170 = vector.broadcast %cst_19 : f32 to vector<4x4x8xf32>
    %171 = vector.extract_strided_slice %4 {offsets = [2, 0, 0, 0], sizes = [1, 4, 4, 8], strides = [1, 1, 1, 1]} : vector<4x5x4x9xf32> to vector<1x4x4x8xf32>
    %172 = vector.shape_cast %171 : vector<1x4x4x8xf32> to vector<4x4x8xf32>
    %173 = vector.extract_strided_slice %5 {offsets = [0, 0, 0], sizes = [1, 4, 1], strides = [1, 1, 1]} : vector<9x4x1xf32> to vector<1x4x1xf32>
    %174 = vector.shape_cast %173 : vector<1x4x1xf32> to vector<4x1xf32>
    %175 = vector.shape_cast %174 : vector<4x1xf32> to vector<1x4x1xf32>
    %176 = vector.broadcast %175 : vector<1x4x1xf32> to vector<4x4x8xf32>
    %177 = arith.mulf %172, %176 : vector<4x4x8xf32>
    %178 = arith.addf %170, %177 : vector<4x4x8xf32>
    %179 = vector.extract_strided_slice %4 {offsets = [3, 0, 0, 0], sizes = [1, 4, 4, 8], strides = [1, 1, 1, 1]} : vector<4x5x4x9xf32> to vector<1x4x4x8xf32>
    %180 = vector.shape_cast %179 : vector<1x4x4x8xf32> to vector<4x4x8xf32>
    %181 = vector.extract_strided_slice %5 {offsets = [1, 0, 0], sizes = [1, 4, 1], strides = [1, 1, 1]} : vector<9x4x1xf32> to vector<1x4x1xf32>
    %182 = vector.shape_cast %181 : vector<1x4x1xf32> to vector<4x1xf32>
    %183 = vector.shape_cast %182 : vector<4x1xf32> to vector<1x4x1xf32>
    %184 = vector.broadcast %183 : vector<1x4x1xf32> to vector<4x4x8xf32>
    %185 = arith.mulf %180, %184 : vector<4x4x8xf32>
    %186 = arith.addf %178, %185 : vector<4x4x8xf32>
    %187 = vector.extract_strided_slice %4 {offsets = [2, 0, 0, 1], sizes = [1, 4, 4, 8], strides = [1, 1, 1, 1]} : vector<4x5x4x9xf32> to vector<1x4x4x8xf32>
    %188 = vector.shape_cast %187 : vector<1x4x4x8xf32> to vector<4x4x8xf32>
    %189 = vector.extract_strided_slice %5 {offsets = [2, 0, 0], sizes = [1, 4, 1], strides = [1, 1, 1]} : vector<9x4x1xf32> to vector<1x4x1xf32>
    %190 = vector.shape_cast %189 : vector<1x4x1xf32> to vector<4x1xf32>
    %191 = vector.shape_cast %190 : vector<4x1xf32> to vector<1x4x1xf32>
    %192 = vector.broadcast %191 : vector<1x4x1xf32> to vector<4x4x8xf32>
    %193 = arith.mulf %188, %192 : vector<4x4x8xf32>
    %194 = arith.addf %186, %193 : vector<4x4x8xf32>
    %195 = vector.extract_strided_slice %4 {offsets = [0, 1, 0, 0], sizes = [1, 4, 4, 8], strides = [1, 1, 1, 1]} : vector<4x5x4x9xf32> to vector<1x4x4x8xf32>
    %196 = vector.shape_cast %195 : vector<1x4x4x8xf32> to vector<4x4x8xf32>
    %197 = vector.extract_strided_slice %5 {offsets = [3, 0, 0], sizes = [1, 4, 1], strides = [1, 1, 1]} : vector<9x4x1xf32> to vector<1x4x1xf32>
    %198 = vector.shape_cast %197 : vector<1x4x1xf32> to vector<4x1xf32>
    %199 = vector.shape_cast %198 : vector<4x1xf32> to vector<1x4x1xf32>
    %200 = vector.broadcast %199 : vector<1x4x1xf32> to vector<4x4x8xf32>
    %201 = arith.mulf %196, %200 : vector<4x4x8xf32>
    %202 = arith.addf %194, %201 : vector<4x4x8xf32>
    %203 = vector.extract_strided_slice %4 {offsets = [1, 1, 0, 0], sizes = [1, 4, 4, 8], strides = [1, 1, 1, 1]} : vector<4x5x4x9xf32> to vector<1x4x4x8xf32>
    %204 = vector.shape_cast %203 : vector<1x4x4x8xf32> to vector<4x4x8xf32>
    %205 = vector.extract_strided_slice %5 {offsets = [4, 0, 0], sizes = [1, 4, 1], strides = [1, 1, 1]} : vector<9x4x1xf32> to vector<1x4x1xf32>
    %206 = vector.shape_cast %205 : vector<1x4x1xf32> to vector<4x1xf32>
    %207 = vector.shape_cast %206 : vector<4x1xf32> to vector<1x4x1xf32>
    %208 = vector.broadcast %207 : vector<1x4x1xf32> to vector<4x4x8xf32>
    %209 = arith.mulf %204, %208 : vector<4x4x8xf32>
    %210 = arith.addf %202, %209 : vector<4x4x8xf32>
    %211 = vector.extract_strided_slice %4 {offsets = [0, 1, 0, 1], sizes = [1, 4, 4, 8], strides = [1, 1, 1, 1]} : vector<4x5x4x9xf32> to vector<1x4x4x8xf32>
    %212 = vector.shape_cast %211 : vector<1x4x4x8xf32> to vector<4x4x8xf32>
    %213 = vector.extract_strided_slice %5 {offsets = [5, 0, 0], sizes = [1, 4, 1], strides = [1, 1, 1]} : vector<9x4x1xf32> to vector<1x4x1xf32>
    %214 = vector.shape_cast %213 : vector<1x4x1xf32> to vector<4x1xf32>
    %215 = vector.shape_cast %214 : vector<4x1xf32> to vector<1x4x1xf32>
    %216 = vector.broadcast %215 : vector<1x4x1xf32> to vector<4x4x8xf32>
    %217 = arith.mulf %212, %216 : vector<4x4x8xf32>
    %218 = arith.addf %210, %217 : vector<4x4x8xf32>
    %219 = vector.extract_strided_slice %4 {offsets = [2, 1, 0, 0], sizes = [1, 4, 4, 8], strides = [1, 1, 1, 1]} : vector<4x5x4x9xf32> to vector<1x4x4x8xf32>
    %220 = vector.shape_cast %219 : vector<1x4x4x8xf32> to vector<4x4x8xf32>
    %221 = vector.extract_strided_slice %5 {offsets = [6, 0, 0], sizes = [1, 4, 1], strides = [1, 1, 1]} : vector<9x4x1xf32> to vector<1x4x1xf32>
    %222 = vector.shape_cast %221 : vector<1x4x1xf32> to vector<4x1xf32>
    %223 = vector.shape_cast %222 : vector<4x1xf32> to vector<1x4x1xf32>
    %224 = vector.broadcast %223 : vector<1x4x1xf32> to vector<4x4x8xf32>
    %225 = arith.mulf %220, %224 : vector<4x4x8xf32>
    %226 = arith.addf %218, %225 : vector<4x4x8xf32>
    %227 = vector.extract_strided_slice %4 {offsets = [3, 1, 0, 0], sizes = [1, 4, 4, 8], strides = [1, 1, 1, 1]} : vector<4x5x4x9xf32> to vector<1x4x4x8xf32>
    %228 = vector.shape_cast %227 : vector<1x4x4x8xf32> to vector<4x4x8xf32>
    %229 = vector.extract_strided_slice %5 {offsets = [7, 0, 0], sizes = [1, 4, 1], strides = [1, 1, 1]} : vector<9x4x1xf32> to vector<1x4x1xf32>
    %230 = vector.shape_cast %229 : vector<1x4x1xf32> to vector<4x1xf32>
    %231 = vector.shape_cast %230 : vector<4x1xf32> to vector<1x4x1xf32>
    %232 = vector.broadcast %231 : vector<1x4x1xf32> to vector<4x4x8xf32>
    %233 = arith.mulf %228, %232 : vector<4x4x8xf32>
    %234 = arith.addf %226, %233 : vector<4x4x8xf32>
    %235 = vector.extract_strided_slice %4 {offsets = [2, 1, 0, 1], sizes = [1, 4, 4, 8], strides = [1, 1, 1, 1]} : vector<4x5x4x9xf32> to vector<1x4x4x8xf32>
    %236 = vector.shape_cast %235 : vector<1x4x4x8xf32> to vector<4x4x8xf32>
    %237 = vector.extract_strided_slice %5 {offsets = [8, 0, 0], sizes = [1, 4, 1], strides = [1, 1, 1]} : vector<9x4x1xf32> to vector<1x4x1xf32>
    %238 = vector.shape_cast %237 : vector<1x4x1xf32> to vector<4x1xf32>
    %239 = vector.shape_cast %238 : vector<4x1xf32> to vector<1x4x1xf32>
    %240 = vector.broadcast %239 : vector<1x4x1xf32> to vector<4x4x8xf32>
    %241 = arith.mulf %236, %240 : vector<4x4x8xf32>
    %242 = arith.addf %234, %241 : vector<4x4x8xf32>
    %243 = vector.shape_cast %6 : vector<4x1xf32> to vector<1x4x1xf32>
    %244 = vector.broadcast %243 : vector<1x4x1xf32> to vector<4x4x8xf32>
    %245 = arith.mulf %242, %244 : vector<4x4x8xf32>
    %246 = vector.shape_cast %7 : vector<4x1xf32> to vector<1x4x1xf32>
    %247 = vector.broadcast %246 : vector<1x4x1xf32> to vector<4x4x8xf32>
    %248 = arith.addf %245, %247 : vector<4x4x8xf32>
    %cst_20 = arith.constant 0.000000e+00 : f32
    %249 = vector.broadcast %cst_20 : f32 to vector<4x4x8xf32>
    %250 = arith.maximumf %248, %249 : vector<4x4x8xf32>
    %cst_21 = arith.constant 0.000000e+00 : f32
    %251 = vector.broadcast %cst_21 : f32 to vector<4x4x8xf32>
    %252 = vector.extract_strided_slice %4 {offsets = [3, 0, 0, 0], sizes = [1, 4, 4, 8], strides = [1, 1, 1, 1]} : vector<4x5x4x9xf32> to vector<1x4x4x8xf32>
    %253 = vector.shape_cast %252 : vector<1x4x4x8xf32> to vector<4x4x8xf32>
    %254 = vector.extract_strided_slice %5 {offsets = [0, 0, 0], sizes = [1, 4, 1], strides = [1, 1, 1]} : vector<9x4x1xf32> to vector<1x4x1xf32>
    %255 = vector.shape_cast %254 : vector<1x4x1xf32> to vector<4x1xf32>
    %256 = vector.shape_cast %255 : vector<4x1xf32> to vector<1x4x1xf32>
    %257 = vector.broadcast %256 : vector<1x4x1xf32> to vector<4x4x8xf32>
    %258 = arith.mulf %253, %257 : vector<4x4x8xf32>
    %259 = arith.addf %251, %258 : vector<4x4x8xf32>
    %260 = vector.extract_strided_slice %4 {offsets = [2, 0, 0, 1], sizes = [1, 4, 4, 8], strides = [1, 1, 1, 1]} : vector<4x5x4x9xf32> to vector<1x4x4x8xf32>
    %261 = vector.shape_cast %260 : vector<1x4x4x8xf32> to vector<4x4x8xf32>
    %262 = vector.extract_strided_slice %5 {offsets = [1, 0, 0], sizes = [1, 4, 1], strides = [1, 1, 1]} : vector<9x4x1xf32> to vector<1x4x1xf32>
    %263 = vector.shape_cast %262 : vector<1x4x1xf32> to vector<4x1xf32>
    %264 = vector.shape_cast %263 : vector<4x1xf32> to vector<1x4x1xf32>
    %265 = vector.broadcast %264 : vector<1x4x1xf32> to vector<4x4x8xf32>
    %266 = arith.mulf %261, %265 : vector<4x4x8xf32>
    %267 = arith.addf %259, %266 : vector<4x4x8xf32>
    %268 = vector.extract_strided_slice %4 {offsets = [3, 0, 0, 1], sizes = [1, 4, 4, 8], strides = [1, 1, 1, 1]} : vector<4x5x4x9xf32> to vector<1x4x4x8xf32>
    %269 = vector.shape_cast %268 : vector<1x4x4x8xf32> to vector<4x4x8xf32>
    %270 = vector.extract_strided_slice %5 {offsets = [2, 0, 0], sizes = [1, 4, 1], strides = [1, 1, 1]} : vector<9x4x1xf32> to vector<1x4x1xf32>
    %271 = vector.shape_cast %270 : vector<1x4x1xf32> to vector<4x1xf32>
    %272 = vector.shape_cast %271 : vector<4x1xf32> to vector<1x4x1xf32>
    %273 = vector.broadcast %272 : vector<1x4x1xf32> to vector<4x4x8xf32>
    %274 = arith.mulf %269, %273 : vector<4x4x8xf32>
    %275 = arith.addf %267, %274 : vector<4x4x8xf32>
    %276 = vector.extract_strided_slice %4 {offsets = [1, 1, 0, 0], sizes = [1, 4, 4, 8], strides = [1, 1, 1, 1]} : vector<4x5x4x9xf32> to vector<1x4x4x8xf32>
    %277 = vector.shape_cast %276 : vector<1x4x4x8xf32> to vector<4x4x8xf32>
    %278 = vector.extract_strided_slice %5 {offsets = [3, 0, 0], sizes = [1, 4, 1], strides = [1, 1, 1]} : vector<9x4x1xf32> to vector<1x4x1xf32>
    %279 = vector.shape_cast %278 : vector<1x4x1xf32> to vector<4x1xf32>
    %280 = vector.shape_cast %279 : vector<4x1xf32> to vector<1x4x1xf32>
    %281 = vector.broadcast %280 : vector<1x4x1xf32> to vector<4x4x8xf32>
    %282 = arith.mulf %277, %281 : vector<4x4x8xf32>
    %283 = arith.addf %275, %282 : vector<4x4x8xf32>
    %284 = vector.extract_strided_slice %4 {offsets = [0, 1, 0, 1], sizes = [1, 4, 4, 8], strides = [1, 1, 1, 1]} : vector<4x5x4x9xf32> to vector<1x4x4x8xf32>
    %285 = vector.shape_cast %284 : vector<1x4x4x8xf32> to vector<4x4x8xf32>
    %286 = vector.extract_strided_slice %5 {offsets = [4, 0, 0], sizes = [1, 4, 1], strides = [1, 1, 1]} : vector<9x4x1xf32> to vector<1x4x1xf32>
    %287 = vector.shape_cast %286 : vector<1x4x1xf32> to vector<4x1xf32>
    %288 = vector.shape_cast %287 : vector<4x1xf32> to vector<1x4x1xf32>
    %289 = vector.broadcast %288 : vector<1x4x1xf32> to vector<4x4x8xf32>
    %290 = arith.mulf %285, %289 : vector<4x4x8xf32>
    %291 = arith.addf %283, %290 : vector<4x4x8xf32>
    %292 = vector.extract_strided_slice %4 {offsets = [1, 1, 0, 1], sizes = [1, 4, 4, 8], strides = [1, 1, 1, 1]} : vector<4x5x4x9xf32> to vector<1x4x4x8xf32>
    %293 = vector.shape_cast %292 : vector<1x4x4x8xf32> to vector<4x4x8xf32>
    %294 = vector.extract_strided_slice %5 {offsets = [5, 0, 0], sizes = [1, 4, 1], strides = [1, 1, 1]} : vector<9x4x1xf32> to vector<1x4x1xf32>
    %295 = vector.shape_cast %294 : vector<1x4x1xf32> to vector<4x1xf32>
    %296 = vector.shape_cast %295 : vector<4x1xf32> to vector<1x4x1xf32>
    %297 = vector.broadcast %296 : vector<1x4x1xf32> to vector<4x4x8xf32>
    %298 = arith.mulf %293, %297 : vector<4x4x8xf32>
    %299 = arith.addf %291, %298 : vector<4x4x8xf32>
    %300 = vector.extract_strided_slice %4 {offsets = [3, 1, 0, 0], sizes = [1, 4, 4, 8], strides = [1, 1, 1, 1]} : vector<4x5x4x9xf32> to vector<1x4x4x8xf32>
    %301 = vector.shape_cast %300 : vector<1x4x4x8xf32> to vector<4x4x8xf32>
    %302 = vector.extract_strided_slice %5 {offsets = [6, 0, 0], sizes = [1, 4, 1], strides = [1, 1, 1]} : vector<9x4x1xf32> to vector<1x4x1xf32>
    %303 = vector.shape_cast %302 : vector<1x4x1xf32> to vector<4x1xf32>
    %304 = vector.shape_cast %303 : vector<4x1xf32> to vector<1x4x1xf32>
    %305 = vector.broadcast %304 : vector<1x4x1xf32> to vector<4x4x8xf32>
    %306 = arith.mulf %301, %305 : vector<4x4x8xf32>
    %307 = arith.addf %299, %306 : vector<4x4x8xf32>
    %308 = vector.extract_strided_slice %4 {offsets = [2, 1, 0, 1], sizes = [1, 4, 4, 8], strides = [1, 1, 1, 1]} : vector<4x5x4x9xf32> to vector<1x4x4x8xf32>
    %309 = vector.shape_cast %308 : vector<1x4x4x8xf32> to vector<4x4x8xf32>
    %310 = vector.extract_strided_slice %5 {offsets = [7, 0, 0], sizes = [1, 4, 1], strides = [1, 1, 1]} : vector<9x4x1xf32> to vector<1x4x1xf32>
    %311 = vector.shape_cast %310 : vector<1x4x1xf32> to vector<4x1xf32>
    %312 = vector.shape_cast %311 : vector<4x1xf32> to vector<1x4x1xf32>
    %313 = vector.broadcast %312 : vector<1x4x1xf32> to vector<4x4x8xf32>
    %314 = arith.mulf %309, %313 : vector<4x4x8xf32>
    %315 = arith.addf %307, %314 : vector<4x4x8xf32>
    %316 = vector.extract_strided_slice %4 {offsets = [3, 1, 0, 1], sizes = [1, 4, 4, 8], strides = [1, 1, 1, 1]} : vector<4x5x4x9xf32> to vector<1x4x4x8xf32>
    %317 = vector.shape_cast %316 : vector<1x4x4x8xf32> to vector<4x4x8xf32>
    %318 = vector.extract_strided_slice %5 {offsets = [8, 0, 0], sizes = [1, 4, 1], strides = [1, 1, 1]} : vector<9x4x1xf32> to vector<1x4x1xf32>
    %319 = vector.shape_cast %318 : vector<1x4x1xf32> to vector<4x1xf32>
    %320 = vector.shape_cast %319 : vector<4x1xf32> to vector<1x4x1xf32>
    %321 = vector.broadcast %320 : vector<1x4x1xf32> to vector<4x4x8xf32>
    %322 = arith.mulf %317, %321 : vector<4x4x8xf32>
    %323 = arith.addf %315, %322 : vector<4x4x8xf32>
    %324 = vector.shape_cast %6 : vector<4x1xf32> to vector<1x4x1xf32>
    %325 = vector.broadcast %324 : vector<1x4x1xf32> to vector<4x4x8xf32>
    %326 = arith.mulf %323, %325 : vector<4x4x8xf32>
    %327 = vector.shape_cast %7 : vector<4x1xf32> to vector<1x4x1xf32>
    %328 = vector.broadcast %327 : vector<1x4x1xf32> to vector<4x4x8xf32>
    %329 = arith.addf %326, %328 : vector<4x4x8xf32>
    %cst_22 = arith.constant 0.000000e+00 : f32
    %330 = vector.broadcast %cst_22 : f32 to vector<4x4x8xf32>
    %331 = arith.maximumf %329, %330 : vector<4x4x8xf32>
    %332 = tpu.concatenate %88, %169, %250, %331 in 0 : vector<4x4x8xf32>, vector<4x4x8xf32>, vector<4x4x8xf32>, vector<4x4x8xf32> -> vector<16x4x8xf32>
    %333 = tpu.transpose %332, [0, 2, 1] : vector<16x4x8xf32> -> vector<16x8x4xf32>
    %334 = vector.shape_cast %333 : vector<16x8x4xf32> to vector<128x4xf32>
    %c0_23 = arith.constant 0 : index
    %c0_24 = arith.constant 0 : index
    %335 = vector.load %arg7[%c0_23, %c0_24] : memref<4x8xf32, #tpu.memory_space<vmem>>, vector<4x8xf32>
    %cst_25 = arith.constant dense<0.000000e+00> : vector<128x8xf32>
    %336 = tpu.matmul %334, %335, %cst_25 {dimension_numbers = #tpu.dot_dimension_numbers<[1], [0], [0], [1], [0, 0, 1, 1], [], []>} : vector<128x4xf32>, vector<4x8xf32>, vector<128x8xf32> -> vector<128x8xf32>
    %c0_26 = arith.constant 0 : index
    %c0_27 = arith.constant 0 : index
    %337 = vector.load %arg8[%c0_26, %c0_27] : memref<1x8xf32, #tpu.memory_space<vmem>>, vector<1x8xf32>
    %338 = vector.broadcast %337 : vector<1x8xf32> to vector<128x8xf32>
    %339 = arith.mulf %336, %338 : vector<128x8xf32>
    %c0_28 = arith.constant 0 : index
    %c0_29 = arith.constant 0 : index
    %340 = vector.load %arg9[%c0_28, %c0_29] : memref<1x8xf32, #tpu.memory_space<vmem>>, vector<1x8xf32>
    %341 = vector.broadcast %340 : vector<1x8xf32> to vector<128x8xf32>
    %342 = arith.addf %339, %341 : vector<128x8xf32>
    %cst_30 = arith.constant 0.000000e+00 : f32
    %343 = vector.broadcast %cst_30 : f32 to vector<128x8xf32>
    %344 = arith.maximumf %342, %343 : vector<128x8xf32>
    %345 = vector.extract_strided_slice %344 {offsets = [0, 0], sizes = [32, 8], strides = [1, 1]} : vector<128x8xf32> to vector<32x8xf32>
    %346 = vector.extract_strided_slice %344 {offsets = [32, 0], sizes = [32, 8], strides = [1, 1]} : vector<128x8xf32> to vector<32x8xf32>
    %347 = arith.maximumf %345, %346 : vector<32x8xf32>
    %348 = vector.extract_strided_slice %344 {offsets = [64, 0], sizes = [32, 8], strides = [1, 1]} : vector<128x8xf32> to vector<32x8xf32>
    %349 = vector.extract_strided_slice %344 {offsets = [96, 0], sizes = [32, 8], strides = [1, 1]} : vector<128x8xf32> to vector<32x8xf32>
    %350 = arith.maximumf %348, %349 : vector<32x8xf32>
    %351 = arith.maximumf %347, %350 : vector<32x8xf32>
    %352 = vector.shape_cast %351 : vector<32x8xf32> to vector<4x8x8xf32>
    %c0_31 = arith.constant 0 : index
    %c0_32 = arith.constant 0 : index
    %c0_33 = arith.constant 0 : index
    %c0_34 = arith.constant 0 : index
    %353 = vector.load %arg10[%c0_31, %c0_32, %c0_33, %c0_34] : memref<1x4x8x8xf32, #tpu.memory_space<vmem>>, vector<1x4x8x8xf32>
    %354 = vector.shape_cast %353 : vector<1x4x8x8xf32> to vector<4x8x8xf32>
    %355 = vector.shape_cast %352 : vector<4x8x8xf32> to vector<1x4x8x8xf32>
    tpu.vector_store %arg10[%c0_31, %c0_32, %c0_33, %c0_34], %355 {strides = array<i32>} : memref<1x4x8x8xf32, #tpu.memory_space<vmem>>, vector<1x4x8x8xf32>,
    return
  }
  func.func @transform_0(%arg0: i32, %arg1: i32) -> (i32, i32, i32, i32, i32) {
    %c0_i32 = arith.constant 0 : i32
    %c0_i32_0 = arith.constant 0 : i32
    %c0_i32_1 = arith.constant 0 : i32
    %c0_i32_2 = arith.constant 0 : i32
    return %arg0, %c0_i32, %arg1, %c0_i32_0, %c0_i32_1 : i32, i32, i32, i32, i32
  }
  func.func @transform_1(%arg0: i32, %arg1: i32) -> (i32, i32, i32, i32, i32) {
    %c1_i32 = arith.constant 1 : i32
    %0 = arith.addi %arg1, %c1_i32 : i32
    %c4_i32 = arith.constant 4 : i32
    %1 = arith.muli %0, %c4_i32 : i32
    %c0_i32 = arith.constant 0 : i32
    %c0_i32_0 = arith.constant 0 : i32
    %c0_i32_1 = arith.constant 0 : i32
    %c0_i32_2 = arith.constant 0 : i32
    return %arg0, %c0_i32, %1, %c0_i32_0, %c0_i32_1 : i32, i32, i32, i32, i32
  }
  func.func @transform_2(%arg0: i32, %arg1: i32) -> (i32, i32, i32) {
    %c0_i32 = arith.constant 0 : i32
    %c0_i32_0 = arith.constant 0 : i32
    %c0_i32_1 = arith.constant 0 : i32
    %c0_i32_2 = arith.constant 0 : i32
    return %c0_i32, %c0_i32_0, %c0_i32_1 : i32, i32, i32
  }
  func.func @transform_3(%arg0: i32, %arg1: i32) -> (i32, i32) {
    %c0_i32 = arith.constant 0 : i32
    %c0_i32_0 = arith.constant 0 : i32
    %c0_i32_1 = arith.constant 0 : i32
    return %c0_i32, %c0_i32_0 : i32, i32
  }
  func.func @transform_4(%arg0: i32, %arg1: i32) -> (i32, i32) {
    %c0_i32 = arith.constant 0 : i32
    %c0_i32_0 = arith.constant 0 : i32
    %c0_i32_1 = arith.constant 0 : i32
    return %c0_i32, %c0_i32_0 : i32, i32
  }
  func.func @transform_5(%arg0: i32, %arg1: i32) -> (i32, i32) {
    %c0_i32 = arith.constant 0 : i32
    %c0_i32_0 = arith.constant 0 : i32
    %c0_i32_1 = arith.constant 0 : i32
    return %c0_i32, %c0_i32_0 : i32, i32
  }
  func.func @transform_6(%arg0: i32, %arg1: i32) -> (i32, i32) {
    %c0_i32 = arith.constant 0 : i32
    %c0_i32_0 = arith.constant 0 : i32
    %c0_i32_1 = arith.constant 0 : i32
    return %c0_i32, %c0_i32_0 : i32, i32
  }
  func.func @transform_7(%arg0: i32, %arg1: i32) -> (i32, i32) {
    %c0_i32 = arith.constant 0 : i32
    %c0_i32_0 = arith.constant 0 : i32
    %c0_i32_1 = arith.constant 0 : i32
    return %c0_i32, %c0_i32_0 : i32, i32
  }
  func.func @transform_8(%arg0: i32, %arg1: i32) -> (i32, i32, i32, i32) {
    %c0_i32 = arith.constant 0 : i32
    %c0_i32_0 = arith.constant 0 : i32
    %c0_i32_1 = arith.constant 0 : i32
    return %arg0, %arg1, %c0_i32, %c0_i32_0 : i32, i32, i32, i32
  }
}

</mosaic_0001>

<bundles_post_ra>
// kernel: tpu_custom_call.1
= control target key start
LH: loop header
LB: loop body
LE: loop exit
PB: predicated region body
PF: predicated region fallthrough
CT: control target
= control target key end

     0   :  { %s3428_s0 = inlined_call_operand.hbm [shape: f32[2,4,9,4,9], index: 0, kind: input, shape index: {}]   ;;  %s3429_s1 = inlined_call_operand.hbm [shape: f32[2,4,9,4,9], index: 1, kind: input, shape index: {}]   ;;  %s3430_s2 = inlined_call_operand.vmem [shape: f32[9,4,1], index: 2, kind: input, shape index: {}]   ;;  %s3431_s3 = inlined_call_operand.vmem [shape: f32[4,1], index: 3, kind: input, shape index: {}]   ;;  %s3432_s4 = inlined_call_operand.vmem [shape: f32[4,1], index: 4, kind: input, shape index: {}]   ;;  %s3433_s5 = inlined_call_operand.vmem [shape: f32[4,8], index: 5, kind: input, shape index: {}]   ;;  %s3434_s6 = inlined_call_operand.vmem [shape: f32[1,8], index: 6, kind: input, shape index: {}]   ;;  %s3435_s7 = inlined_call_operand.vmem [shape: f32[1,8], index: 7, kind: input, shape index: {}]   ;;  %s3436_s8 = inlined_call_operand.hbm [shape: f32[2,8,8,8], index: 8, kind: output, shape index: {}]  }
   0x1   :  { %3447 = sst [smem:[#allocation67_spill]] %s3433_s5 }
   0x2   :  { %3448 = sst [smem:[#allocation68_spill]] %s3434_s6 }
   0x3   :  { %3449 = sst [smem:[#allocation69_spill]] %s3435_s7 }
   0x4   :  { %3450 = sst [smem:[#allocation70_spill]] %s3436_s8 }
   0x5   :  { %13 = vsyncpa [#allocation3], 0 }
   0x6   :  { %15 = vsyncpa [#allocation3 + $0x1], 0 }
   0x7   :  { %16 = vsyncpa [#allocation6], 0 }
   0x8   :  { %18 = vsyncpa [#allocation6 + $0x1], 0 }
   0x9   :  { %19 = vsyncpa [#allocation4], 0 }
   0xa   :  { %21 = vsyncpa [#allocation4 + $0x1], 0  ;;  %s2370_s27 = smov 0   ;;  %s2372_s28 = smov 0  }
   0xb   :  { %s2374_s29 = smov 0   ;;  %s2376_s30 = smov 0  }
   0xc   :  { %s2378_s9 = smov 0   ;;  %s2380_s10 = smov 0  }
   0xd   :  { %s2382_s11 = smov 0   ;;  %s2384_s12 = smov 0  }
   0xe   :  { %s2386_s13 = smov 0   ;;  %s2388_s14 = smov 0  }
   0xf   :  { %s2390_s15 = smov 0  }
  0x10 LB: > { %3451 = sst [smem:[#allocation13_spill]] %s2283_s30  ;;  %s3437_s16 = sadd.s32 4294967295, %s2311_s15   ;;  %s2311_s15 = sphi %s2390_s15, %s27_s15   ;;  %s2307_s14 = sphi %s2388_s14, %s3579_s14   ;;  %s2303_s13 = sphi %s2386_s13, %s3571_s13   ;;  %s2299_s12 = sphi %s2384_s12, %s3578_s12   ;;  %s2295_s11 = sphi %s2382_s11, %s3570_s11   ;;  %s2291_s10 = sphi %s2380_s10, %s3569_s10   ;;  %s2287_s9 = sphi %s2378_s9, %s3577_s9   ;;  %s2283_s30 = sphi %s2376_s30, %s3576_s30   ;;  %s2279_s29 = sphi %s2374_s29, %s3575_s29   ;;  %s2275_s28 = sphi %s2372_s28, %s3574_s28   ;;  %s2271_s27 = sphi %s2370_s27, %s3573_s27  }
  0x11   : > { %3452 = sst [smem:[#allocation14_spill]] %s2291_s10  ;;  %s36_s18 = sadd.s32 1, %s2303_s13 }
  0x12   : > { %3453 = sst [smem:[#allocation15_spill]] %s2295_s11  ;;  %s39_s19 = sadd.s32 1, %s2307_s14 }
  0x13   : > { %3454 = sst [smem:[#allocation16_spill]] %s2299_s12  ;;  %p37_p0 = scmp.ge.s32.totalorder %s36_s18, 2 }
  0x14   : > { %3455 = sst [smem:[#allocation17_spill]] %s2303_s13  ;;  %s48_s20 = sadd.s32 1, %s2291_s10 }
  0x15   : > { %p55_p1 = scmp.ne.s32.totalorder %s2291_s10, %s2287_s9  ;;  %p56_p2 = scmp.eq.s32.totalorder %s2311_s15, 0 }
  0x16   : > { %s3581_s18 = smov (%p37_p0, %s36_s18), 0  ;;  %s3583_s19 = smov (!%p37_p0, %s39_s19), %s2307_s14 }
  0x17   : > { %3456 = sst [smem:[#allocation18_spill]] %s3581_s18  ;;  %s44_s21 = ssub.s32 %s2303_s13, %s3581_s18 }
  0x18   : > { %p2443_p3 = por %p56_p2, %p55_p1  ;;  %p41_p4 = scmp.ge.s32.totalorder %s3583_s19, 2 }
  0x19   : > { %p61_p5 = scmp.ne.s32.totalorder %s2287_s9, %s2283_s30  ;;  %p2451_p6 = scmp.eq.s32.totalorder %s3437_s16, 0 }
  0x1a   : > { %s2456_s24 = sshll.u32 %s2303_s13, 2  ;;  %s3585_s19 = smov (%p41_p4, %s3583_s19), 0 }
  0x1b   : > { %3459 = sst [smem:[#allocation19_spill]] %s3585_s19  ;;  %p2465_p7 = por %p2451_p6, %p61_p5 }
  0x1c   : > { %s2032_s26 = sadd.s32 4, %s2456_s24  ;;  %s43_s17 = ssub.s32 %s2307_s14, %s3585_s19 }
  0x1d   : > { %s2033_s16 = sshll.u32 %s3581_s18, 2  ;;  %s45_s13 = sor.u32 %s44_s21, %s43_s17 }
  0x1e   : > { %s2034_s8 = sadd.s32 4, %s2033_s16  ;;  %p46_p8 = scmp.eq.s32.totalorder %s45_s13, 0 }
  0x1f   : > { %s76_s12 = ssub.s32 %s2032_s26, %s2034_s8  ;;  %s80_s7 = sadd.s32 1, %s2279_s29 }
  0x20   : > { %s77_s11 = sor.u32 %s76_s12, %s43_s17  ;;  %p87_p10 = scmp.ne.s32.totalorder %s2279_s29, %s2275_s28 }
  0x21   : > { %s2475_s6 = scalar_select %p46_p8, %s2291_s10, %s48_s20  }
  0x22   : > { %p78_p9 = scmp.eq.s32.totalorder %s77_s11, 0  ;;  %p93_p11 = scmp.ne.s32.totalorder %s2275_s28, %s2271_s27 }
  0x23   : > { %3461 = sst [smem:[#allocation20_spill]] %s2475_s6  ;;  %s3462_s5 = sadd.s32 4294967295, %s2311_s15  }
  0x24   : > { %p245_p12 = scmp.eq.s32.totalorder %s3462_s5, 3  ;;  %p2488_p13 = por %p87_p10, %p56_p2 }
  0x25   : > { %s2484_s19 = scalar_select %p78_p9, %s2279_s29, %s80_s7  }
  0x26   : > { %p2494_p0 = por %p93_p11, %p2451_p6  ;;  %p2501_p4 = por %p245_p12, %p55_p1 }
  0x27   : > { %3463 = sst [smem:[#allocation21_spill]] %s2484_s19  ;;  %s3468_s27 = sadd.s32 4294967294, %s2311_s15  }
  0x28   : > { %s3466_s8 = scalar_select %p2501_p4, 1, 0 }
  0x29   : > { %p251_p8 = scmp.eq.s32.totalorder %s3468_s27, 3  ;;  %p1990_p2 = scmp.ge.s32.totalorder %s2311_s15, 4 }
  0x2a   : > { %3467 = sst [smem:[#allocation22_spill]] %s3466_s8 }
  0x2b   : > { %p2510_p9 = por %p251_p8, %p61_p5  ;;  %285 = sbr.rel (%p1990_p2) target bundleno = 75 (0x4b), region = 40 }
  0x2d   : > { %s3469_s5 = scalar_select %p2510_p9, 1, 0 }
  0x2f   : > { %3470 = sst [smem:[#allocation23_spill]] %s3469_s5 }
  0x30   : > { %288 = sbr.rel (!%p2443_p3) target bundleno = 67 (0x43), region = 44 }
  0x35   : > { %s289_s7 = sand.u32 1, %s2291_s10   ;;  %s2040_s17 = smul.u32 36, %s2307_s14 }
  0x36   : > { %s1991_s11 = sshll.u32 %s289_s7, 6  ;;  %s290_s12 = scalar_lea.sflag [#allocation3], %s289_s7 }
  0x37   : > { %s293_s16 = scalar_lea.vmem [#allocation2], %s1991_s11  ;;  %s313_s20 = sld [smem:[#allocation0]]  }
  0x38   : > { %s323_s21 = sshll.u32 %s293_s16, 4  ;;  %s304_s23 = sadd.s32 %s2040_s17, %s2456_s24  ;;  %s324_s21 = int_to_ptr.vmem [resolvable:$true] %s323_s21 }
  0x39   : > { %s1995_s26 = sshll.u32 %s304_s23, 2  ;;  %s2313_s22 = smov 576  }
  0x3a   : > { %s306_s19 = scalar_lea.hbm %s3428_s0, %s1995_s26  ;;  %330 = sst [smem:[#allocation9]] %s2313_s22 }
  0x3b   : > { %s321_s5 = sshll.u32 %s306_s19, 4  ;;  %s2314_s8 = smov 256   ;;  %s322_s5 = int_to_ptr.hbm [resolvable:$true] %s321_s5 }
  0x3c   : > { %332 = sst [smem:[#allocation9 + $0x1]] %s2314_s8  ;;  %s2315_s7 = smov 4  }
  0x3d   : > { %s1998_s30 = sshll.u32 %s313_s20, 26  ;;  %334 = sst [smem:[#allocation9 + $0x2]] %s2315_s7 }
  0x3e   : > { %s1999_s10 = sadd.s32 134217728, %s1998_s30  ;;  %s2316_s11 = smov 64  }
  0x3f   : > { %336 = sst [smem:[#allocation9 + $0x3]] %s2316_s11  ;;  %s2317_s16 = smov [#allocation8]  }
  0x40   : > { %338 = sst [smem:[#allocation9 + $0x4]] %s2316_s11 }
  0x41   : > { %340 = sst [smem:[#allocation9 + $0x5]] %s2315_s7 }
  0x42   : > { %342 = dma.general %s322_s5, 1024, %s324_s21, %s290_s12, %s2317_s16, [#allocation9], %s1999_s10, 0  }
  0x43 PF: > { %s346_s6 = sand.u32 1, %s2279_s29   ;;  %s1910_s19 = smul.u32 36, %s2307_s14 }
  0x44   : > { %s2001_s17 = sshll.u32 %s346_s6, 4  ;;  %s347_s10 = scalar_lea.sflag [#allocation6], %s346_s6 }
  0x45   : > { %s1911_s20 = sadd.s32 %s2456_s24, %s1910_s19  ;;  %s350_s8 = scalar_lea.vmem [#allocation5], %s2001_s17 }
  0x46   : > { %s2003_s23 = sshll.u32 %s1911_s20, 2  ;;  %s361_s30 = sshll.u32 %s350_s8, 4  ;;  %s362_s30 = int_to_ptr.vmem [resolvable:$true] %s361_s30 }
  0x47   : > { %s1913_s22 = scalar_lea.hbm %s3429_s1, %s2003_s23  ;;  %s2318_s5 = smov 576  }
  0x48   : > { %s1914_s7 = scalar_lea.hbm %s1913_s22, 16  ;;  %s2319_s12 = smov 64  }
  0x49   : > { %s359_s11 = sshll.u32 %s1914_s7, 4  ;;  %s2320_s21 = smov 4   ;;  %s360_s11 = int_to_ptr.hbm [resolvable:$true] %s359_s11 }
  0x4a   : > { %2041 = dma.hbm_to_vmem [thread:$0]  (%p2488_p13), %s360_s11, 256, %s362_s30, %s347_s10, %s2318_s5, %s2319_s12, %s2320_s21  }
  0x4b PF: > { %p2004_p1 = scmp.ge.s32.totalorder %s2311_s15, 1  ;;  %p369_p3 = scmp.lt.s32.totalorder %s2311_s15, 5 }
  0x4d   : > { %p370_p5 = pnand %p2004_p1, %p369_p3 }
  0x4f   : > { %373 = sbr.rel (%p370_p5) target bundleno = 842 (0x34a), region = 52 }
  0x54   : > { %s2534_s24 = sand.u32 1, %s2287_s9  }
  0x55   : > { %s2005_s16 = sshll.u32 %s2534_s24, 6  ;;  %s376_s6 = scalar_lea.sflag [#allocation3], %s2534_s24 }
  0x56   : > { %s2538_s19 = scalar_lea.vmem [#allocation2], %s2005_s16 }
  0x57   : > { %2258 = dma.done.wait (%p2465_p7), %s376_s6, 1024  }
  0x58   : > { %2260 = vsyncadd (%p2465_p7), %s376_s6, 4294966272  ;;  %s385_s18 = sand.u32 1, %s2275_s28  }
  0x59   : > { %s2006_s17 = sshll.u32 %s385_s18, 4  ;;  %s386_s20 = scalar_lea.sflag [#allocation6], %s385_s18 }
  0x5a   : > { %s2545_s23 = scalar_lea.vmem [#allocation5], %s2006_s17 }
  0x5b   : > { %2262 = dma.done.wait (%p2494_p0), %s386_s20, 256  }
  0x5c   : > { %2264 = vsyncadd (%p2494_p0), %s386_s20, 4294967040  ;;  %v2321_v0 = vmov 0   ;;  %v458_v1 = vld [vmem:[%s3430_s2 + $0x8] sm:$0xf]  ;;  %v456_v2 = vld [vmem:[%s3430_s2] sm:$0xf] }
  0x5d   : > { %2153 = vset.pattern.permute.xlu1 %v2321_v0  ;;  %2152 = vset.pattern.permute.xlu0 %v2321_v0  ;;  %v460_v3 = vld [vmem:[%s3430_s2 + $0x10] sm:$0xf]  ;;  %v459_v4 = vld [vmem:[%s3430_s2 + $0xc] sm:$0xf]  ;;  %v457_v5 = vld [vmem:[%s3430_s2 + $0x4] sm:$0xf] }
  0x5e   : > { %2154 = vset.pattern.permute.xlu2 %v2321_v0  ;;  %495 = vperm.xlu1 %2153, %v458_v1   ;;  %v462_v6 = vld [vmem:[%s3430_s2 + $0x18] sm:$0xf]  ;;  %v464_v7 = vld [vmem:[%s3430_s2 + $0x20] sm:$0xf]  ;;  %v461_v8 = vld [vmem:[%s3430_s2 + $0x14] sm:$0xf] }
  0x5f   : > { %469 = vperm.xlu0 %2152, %v456_v2   ;;  %537 = vperm.xlu2 %2154, %v460_v3   ;;  %v466_v9 = vld [vmem:[%s3432_s4] sm:$0xf]  ;;  %v463_v10 = vld [vmem:[%s3430_s2 + $0x1c] sm:$0xf]  ;;  %v2585_v12 = vld [vmem:[%s2538_s19 + $0xc] sm:$0xf] }
  0x60   : > { %v465_v11 = vld [vmem:[%s3431_s3] sm:$0xf]  ;;  %v2588_v13 = vld [vmem:[%s2538_s19 + $0x4] sm:$0xf]  ;;  %v2604_v20 = vld [vmem:[%s2538_s19 + $0x8] sm:$0xf] }
  0x61   : > { %v2591_v14 = vld [vmem:[%s2538_s19] sm:$0xf]  ;;  %v2607_v21 = vld [vmem:[%s2538_s19 + $0x28] sm:$0xf]  ;;  %v2610_v22 = vld [vmem:[%s2538_s19 + $0x24] sm:$0xf] }
  0x62   : > { %v2613_v23 = vld [vmem:[%s2538_s19 + $0x20] sm:$0xf]  ;;  %s2322_s27 = smov 127   ;;  %v2618_v24 = vld [vmem:[%s2538_s19 + $0x2c] sm:$0xf]  ;;  %s3557_s22 = sld [smem:[#allocation67_spill]] }
  0x63   : > { %v2621_v25 = vld [vmem:[%s2538_s19 + $0x30] sm:$0xf]  ;;  %v2624_v26 = vld [vmem:[%s2538_s19 + $0x34] sm:$0xf]  ;;  %v2636_v30 = vld [vmem:[%s2538_s19 + $0x38] sm:$0xf] }
  0x64   : > { %v2630_v28 = vld [vmem:[%s2538_s19 + $0x10] sm:$0xf]  ;;  %v2633_v29 = vld [vmem:[%s2538_s19 + $0x14] sm:$0xf]  ;;  %v2647_v34 = vld [vmem:[%s2538_s19 + $0x18] sm:$0xf] }
  0x65   : > { %v2650_v35 = vld [vmem:[%s2538_s19 + $0x1c] sm:$0xf]  ;;  %vm1708_vm0 = vcmask 1043456   ;;  %vm1659_vm1 = vcmask 31744   ;;  %s3558_s11 = sld [smem:[#allocation68_spill]]  ;;  %s2007_s21 = sshll.u32 %s2534_s24, 5 }
  0x66   : > { %524 = vperm.xlu1 %2153, %v459_v4   ;;  %v2657_v38 = vld [vmem:[%s2538_s19 + $0x3c] sm:$0xf]  ;;  %s3559_s12 = sld [smem:[#allocation69_spill]]  ;;  %vm1845_vm2 = vcmask 64512   ;;  %s3345_s16 = scalar_lea.vmem [#allocation7], %s2007_s21 }
  0x67   : > { %482 = vperm.xlu0 %2152, %v457_v5   ;;  %579 = vperm.xlu2 %2154, %v462_v6   ;;  %s3560_s6 = sld [smem:[#allocation15_spill]]  ;;  %s1865_s13 = sshll.u32 %s3345_s16, 4  ;;  %s1866_s13 = int_to_ptr.vmem [resolvable:$true] %s1865_s13 }
  0x68   : > { %s3561_s18 = sld [smem:[#allocation16_spill]] }
  0x6d   : > { %s2026_s17 = sshll.u32 %s3560_s6, 2 }
  0x6e   : > { %605 = vperm.xlu1 %2153, %v464_v7   ;;  %s2027_s20 = sshll.u32 %s3561_s18, 3 }
  0x6f   : > { %550 = vperm.xlu0 %2152, %v461_v8   ;;  %643 = vperm.xlu2 %2154, %v466_v9   ;;  %s1862_s8 = sadd.s32 %s2027_s20, %s2026_s17 }
  0x70   : > { %s2028_s30 = sshll.u32 %s1862_s8, 3 }
  0x77   : > { %592 = vperm.xlu0 %2152, %v463_v10  }
  0x7f   : > { %634 = vperm.xlu0 %2152, %v465_v11  }
  0xd0   : > { %v2593_v15 = vpop.permute.xlu1 %495 }
  0xd1   : > { %v2595_v16 = vpop.permute.xlu0 %469  ;;  %v501_v17 = vmul.f32 %v2593_v15, %v2585_v12  ;;  %v499_v18 = vmul.f32 %v2593_v15, %v2588_v13  ;;  %v498_v19 = vmul.f32 %v2593_v15, %v2591_v14  ;;  %v2642_v32 = vmul.f32 %v2593_v15, %v2607_v21 }
  0xd2   : > { %v473_v27 = vmul.f32 %v2595_v16, %v2588_v13  ;;  %v474_v31 = vmul.f32 %v2595_v16, %v2604_v20  ;;  %v475_v33 = vmul.f32 %v2595_v16, %v2585_v12  ;;  %v472_v36 = vmul.f32 %v2595_v16, %v2591_v14 }
  0xd3   : > { %512 = vrot.lane.b32.xlu0 %v501_v17, %s2322_s27  ;;  %508 = vrot.lane.b32.xlu2 %v499_v18, %s2322_s27  ;;  %v834_v37 = vmul.f32 %v2595_v16, %v2613_v23  ;;  %v500_v39 = vmul.f32 %v2593_v15, %v2604_v20  ;;  %v2663_v40 = vmul.f32 %v2593_v15, %v2618_v24 }
  0xd4   : > { %506 = vrot.lane.b32.xlu1 %v498_v19, %s2322_s27  ;;  %v2667_v41 = vmul.f32 %v2595_v16, %v2624_v26  ;;  %v2671_v42 = vmul.f32 %v2595_v16, %v2621_v25  ;;  %v2675_v43 = vmul.f32 %v2595_v16, %v2633_v29  ;;  %v2679_v44 = vmul.f32 %v2595_v16, %v2630_v28 }
  0xd5   : > { %3471 = vst [vmem:[#allocation24_spill] sm:$0xff] %v2663_v40  ;;  %v835_v45 = vmul.f32 %v2595_v16, %v2610_v22  ;;  %v2685_v46 = vmul.f32 %v2595_v16, %v2636_v30  ;;  %v2693_v49 = vmul.f32 %v2595_v16, %v2647_v34  ;;  %v2697_v50 = vmul.f32 %v2595_v16, %v2607_v21 }
  0xd6   : > { %3472 = vst [vmem:[#allocation25_spill] sm:$0xff] %v2667_v41  ;;  %v2701_v51 = vmul.f32 %v2595_v16, %v2657_v38  ;;  %v2705_v52 = vmul.f32 %v2595_v16, %v2650_v35 }
  0xd7   : > { %3473 = vst [vmem:[#allocation26_spill] sm:$0xff] %v2671_v42 }
  0xd8   : > { %3474 = vst [vmem:[#allocation27_spill] sm:$0xff] %v2675_v43  ;;  %v2687_v47 = vpop.permute.xlu1 %524  ;;  %v2884_v43 = vld [vmem:[%s2545_s23 + $0xc] sm:$0xf] }
  0xd9   : > { %3475 = vst [vmem:[#allocation28_spill] sm:$0xff] %v2679_v44  ;;  %v2689_v48 = vpop.permute.xlu0 %482  ;;  %v2719_v56 = vmul.f32 %v2687_v47, %v2610_v22  ;;  %v2726_v58 = vmul.f32 %v2687_v47, %v2607_v21  ;;  %v2736_v61 = vmul.f32 %v2687_v47, %v2618_v24  ;;  %v2746_v1 = vmul.f32 %v2687_v47, %v2613_v23 }
  0xda   : > { %3476 = vst [vmem:[#allocation29_spill] sm:$0xff] %v2685_v46  ;;  %v2709_v53 = vmul.f32 %v2689_v48, %v2588_v13  ;;  %v2713_v54 = vmul.f32 %v2689_v48, %v2607_v21  ;;  %v486_v55 = vmul.f32 %v2689_v48, %v2633_v29  ;;  %v487_v57 = vmul.f32 %v2689_v48, %v2647_v34 }
  0xdb   : > { %3477 = vst [vmem:[#allocation30_spill] sm:$0xff] %v2693_v49  ;;  %510 = vrot.lane.b32.xlu2 %v500_v39, %s2322_s27  ;;  %v2730_v59 = vmul.f32 %v2689_v48, %v2604_v20  ;;  %v488_v60 = vmul.f32 %v2689_v48, %v2650_v35  ;;  %v485_v0 = vmul.f32 %v2689_v48, %v2630_v28 }
  0xdc   : > { %3478 = vst [vmem:[#allocation31_spill] sm:$0xff] %v2701_v51  ;;  %v2738_v62 = vadd.f32 %v486_v55, %v473_v27  ;;  %v2740_v63 = vadd.f32 %v487_v57, %v474_v31  ;;  %v842_v3 = vmul.f32 %v2689_v48, %v2621_v25  ;;  %v2754_v4 = vmul.f32 %v2687_v47, %v2588_v13 }
  0xdd   : > { %3479 = vst [vmem:[#allocation32_spill] sm:$0xff] %v2705_v52  ;;  %v2748_v2 = vadd.f32 %v488_v60, %v475_v33  ;;  %v2758_v5 = vmul.f32 %v2689_v48, %v2618_v24  ;;  %v2760_v6 = vadd.f32 %v485_v0, %v472_v36  ;;  %v2764_v7 = vmul.f32 %v2689_v48, %v2585_v12  ;;  %v452_v0 = vld [vmem:[%s2545_s23] sm:$0xf] }
  0xde   : > { %v2768_v8 = vmul.f32 %v2687_v47, %v2633_v29  ;;  %v2772_v9 = vmul.f32 %v2687_v47, %v2621_v25  ;;  %v2774_v10 = vadd.f32 %v842_v3, %v834_v37  ;;  %v2778_v11 = vmul.f32 %v2687_v47, %v2647_v34 }
  0xdf   : > { %v843_v17 = vmul.f32 %v2689_v48, %v2624_v26  ;;  %v2784_v18 = vmul.f32 %v2687_v47, %v2604_v20  ;;  %v2790_v27 = vmul.f32 %v2687_v47, %v2624_v26  ;;  %v844_v31 = vmul.f32 %v2689_v48, %v2636_v30 }
  0xe0   : > { %3480 = vst [vmem:[#allocation33_spill] sm:$0xff] %v2768_v8  ;;  %v2796_v33 = vmul.f32 %v2687_v47, %v2585_v12  ;;  %v2800_v36 = vmul.f32 %v2687_v47, %v2650_v35  ;;  %v2815_v60 = vpop.permute.xlu1 %605 }
  0xe1   : > { %3481 = vst [vmem:[#allocation34_spill] sm:$0xff] %v2772_v9  ;;  %v2786_v19 = vpop.permute.xlu0 %550  ;;  %v609_v51 = vmul.f32 %v2815_v60, %v2604_v20 }
  0xe2   : > { %3482 = vst [vmem:[#allocation35_spill] sm:$0xff] %v2778_v11  ;;  %v555_v37 = vmul.f32 %v2786_v19, %v2607_v21  ;;  %v554_v39 = vmul.f32 %v2786_v19, %v2610_v22  ;;  %v553_v55 = vmul.f32 %v2786_v19, %v2613_v23  ;;  %v2813_v57 = vmul.f32 %v2786_v19, %v2604_v20 }
  0xe3   : > { %3483 = vst [vmem:[#allocation36_spill] sm:$0xff] %v2784_v18  ;;  %v2820_v3 = vmul.f32 %v2786_v19, %v2585_v12  ;;  %v2823_v52 = vmul.f32 %v2786_v19, %v452_v0  ;;  %v556_v49 = vmul.f32 %v2786_v19, %v2618_v24  ;;  %v1054_v41 = vmul.f32 %v2786_v19, %v2633_v29 }
  0xe4   : > { %3484 = vst [vmem:[#allocation37_spill] sm:$0xff] %v2790_v27  ;;  %565 = vrot.lane.b32.xlu0 %v555_v37, %s2322_s27  ;;  %563 = vrot.lane.b32.xlu2 %v554_v39, %s2322_s27  ;;  %v2827_v37 = vmul.f32 %v2786_v19, %v2636_v30  ;;  %v2840_v27 = vld [vmem:[%s2545_s23 + $0x4] sm:$0xf] }
  0xe5   : > { %3485 = vst [vmem:[#allocation38_spill] sm:$0xff] %v2796_v33  ;;  %561 = vrot.lane.b32.xlu1 %v553_v55, %s2322_s27  ;;  %v2831_v55 = vadd.f32 %v843_v17, %v835_v45  ;;  %v608_v33 = vmul.f32 %v2815_v60, %v2588_v13 }
  0xe6   : > { %3486 = vst [vmem:[#allocation39_spill] sm:$0xff] %v2800_v36 }
  0xe7   : > { %3487 = vst [vmem:[#allocation40_spill] sm:$0xff] %v2823_v52 }
  0xe8   : > { %3488 = vst [vmem:[#allocation41_spill] sm:$0xff] %v2827_v37  ;;  %v2920_v37 = vpop.permute.xlu2 %537 }
  0xe9   : > { %v2829_v39 = vpop.permute.xlu0 %592  ;;  %3489 = vst [vmem:[#allocation42_spill] sm:$0xff] %v2831_v55  ;;  %v2974_v8 = vmul.f32 %v2920_v37, %v2618_v24  ;;  %v2978_v52 = vmul.f32 %v2920_v37, %v2633_v29  ;;  %v1030_v42 = vmul.f32 %v2920_v37, %v2588_v13 }
  0xea   : > { %v2844_v36 = vmul.f32 %v2829_v39, %v2633_v29  ;;  %v2848_v45 = vmul.f32 %v2829_v39, %v2647_v34  ;;  %v2852_v17 = vmul.f32 %v2829_v39, %v2840_v27  ;;  %v2856_v46 = vmul.f32 %v2829_v39, %v2618_v24 }
  0xeb   : > { %v2862_v18 = vmul.f32 %v2829_v39, %v2650_v35  ;;  %v2866_v55 = vmul.f32 %v2829_v39, %v2585_v12  ;;  %v2870_v9 = vmul.f32 %v2829_v39, %v452_v0  ;;  %v2874_v44 = vmul.f32 %v2829_v39, %v2624_v26  ;;  %3503 = vst [vmem:[#allocation56_spill] sm:$0xff] %v2974_v8 }
  0xec   : > { %618 = vrot.lane.b32.xlu0 %v609_v51, %s2322_s27  ;;  %616 = vrot.lane.b32.xlu2 %v608_v33, %s2322_s27  ;;  %v2878_v51 = vmul.f32 %v2829_v39, %v2636_v30  ;;  %v2881_v33 = vadd.f32 %v844_v31, %v2697_v50  ;;  %v2903_v50 = vmul.f32 %v2687_v47, %v2840_v27 }
  0xed   : > { %3490 = vst [vmem:[#allocation43_spill] sm:$0xff] %v2866_v55  ;;  %567 = vrot.lane.b32.xlu1 %v556_v49, %s2322_s27  ;;  %v2888_v55 = vmul.f32 %v2829_v39, %v2657_v38  ;;  %v2892_v49 = vmul.f32 %v2687_v47, %v2636_v30  ;;  %v2907_v31 = vmul.f32 %v2687_v47, %v2657_v38 }
  0xee   : > { %3491 = vst [vmem:[#allocation44_spill] sm:$0xff] %v2870_v9  ;;  %v837_v9 = vmul.f32 %v2595_v16, %v2618_v24  ;;  %v998_v16 = vmul.f32 %v2593_v15, %v2621_v25  ;;  %v2994_v8 = vmul.f32 %v2920_v37, %v2647_v34 }
  0xef   : > { %3492 = vst [vmem:[#allocation45_spill] sm:$0xff] %v2874_v44  ;;  %v845_v44 = vmul.f32 %v2689_v48, %v2657_v38 }
  0xf0   : > { %3493 = vst [vmem:[#allocation46_spill] sm:$0xff] %v2878_v51  ;;  %v2899_v51 = vmul.f32 %v2687_v47, %v452_v0  ;;  %v850_v47 = vmul.f32 %v2593_v15, %v2613_v23 }
  0xf1   : > { %3494 = vst [vmem:[#allocation47_spill] sm:$0xff] %v2881_v33  ;;  %v611_v33 = vmul.f32 %v2815_v60, %v452_v0 }
  0xf2   : > { %3495 = vst [vmem:[#allocation48_spill] sm:$0xff] %v2888_v55  ;;  %v2911_v55 = vmul.f32 %v2829_v39, %v2884_v43 }
  0xf3   : > { %3496 = vst [vmem:[#allocation49_spill] sm:$0xff] %v2892_v49  ;;  %v2913_v49 = vadd.f32 %v845_v44, %v837_v9  ;;  %v686_v44 = vmul.f32 %v2593_v15, %v2630_v28  ;;  %v974_v9 = vmul.f32 %v2689_v48, %v2613_v23  ;;  %v2943_v28 = vmul.f32 %v2920_v37, %v2585_v12 }
  0xf4   : > { %3497 = vst [vmem:[#allocation50_spill] sm:$0xff] %v2899_v51  ;;  %v610_v51 = vmul.f32 %v2815_v60, %v2585_v12  ;;  %1006 = vrot.lane.b32.xlu0 %v998_v16, %s2322_s27  ;;  %622 = vrot.lane.b32.xlu2 %v611_v33, %s2322_s27  ;;  %v2935_v16 = vmul.f32 %v2920_v37, %v2624_v26 }
  0xf5   : > { %3498 = vst [vmem:[#allocation51_spill] sm:$0xff] %v2903_v50  ;;  %v2947_v33 = vmul.f32 %v2920_v37, %v2636_v30 }
  0xf6   : > { %3499 = vst [vmem:[#allocation52_spill] sm:$0xff] %v2907_v31  ;;  %620 = vrot.lane.b32.xlu1 %v610_v51, %s2322_s27 }
  0xf7   : > { %3500 = vst [vmem:[#allocation53_spill] sm:$0xff] %v2911_v55  ;;  %v580_v55 = vpop.permute.xlu2 %579 }
  0xf8   : > { %3501 = vst [vmem:[#allocation54_spill] sm:$0xff] %v2913_v49  ;;  %v2938_v51 = vmul.f32 %v580_v55, %v2604_v20  ;;  %v2957_v31 = vmul.f32 %v580_v55, %v2588_v13  ;;  %v2965_v49 = vmul.f32 %v2920_v37, %v2657_v38  ;;  %v2967_v50 = vmul.f32 %v580_v55, %v452_v0 }
  0xf9   : > { %v2981_v11 = vmul.f32 %v580_v55, %v2610_v22  ;;  %3505 = vst [vmem:[#allocation58_spill] sm:$0xff] %v2994_v8  ;;  %v3003_v40 = vmul.f32 %v580_v55, %v2607_v21  ;;  %v3017_v8 = vmul.f32 %v580_v55, %v2618_v24 }
  0xfb   : > { %3504 = vst [vmem:[#allocation57_spill] sm:$0xff] %v2981_v11  ;;  %v2997_v11 = vmul.f32 %v580_v55, %v2624_v26 }
  0xfc   : > { %694 = vrot.lane.b32.xlu0 %v686_v44, %s2322_s27  ;;  %858 = vrot.lane.b32.xlu2 %v850_v47, %s2322_s27  ;;  %v2950_v44 = vmul.f32 %v580_v55, %v2585_v12  ;;  %v2954_v47 = vmul.f32 %v2920_v37, %v2621_v25  ;;  %v2970_v12 = vmul.f32 %v2920_v37, %v452_v0 }
  0xfd   : > { %v662_v0 = vmul.f32 %v2689_v48, %v2591_v14  ;;  %3507 = vst [vmem:[#allocation60_spill] sm:$0xff] %v3003_v40  ;;  %v3006_v14 = vmul.f32 %v580_v55, %v2636_v30  ;;  %v3023_v40 = vmul.f32 %v580_v55, %v2647_v34 }
  0xfe   : > { %982 = vrot.lane.b32.xlu1 %v974_v9, %s2322_s27  ;;  %v2961_v9 = vmul.f32 %v2920_v37, %v2607_v21  ;;  %3502 = vst [vmem:[#allocation55_spill] sm:$0xff] %v2970_v12  ;;  %v3000_v12 = vmul.f32 %v580_v55, %v2633_v29 }
  0xff   : > { %3508 = vst [vmem:[#allocation61_spill] sm:$0xff] %v3006_v14  ;;  %v890_v14 = vmul.f32 %v2786_v19, %v2588_v13 }
 0x100   : > { %3506 = vst [vmem:[#allocation59_spill] sm:$0xff] %v3000_v12  ;;  %v3020_v12 = vmul.f32 %v580_v55, %v2657_v38 }
 0x101   : > { %3509 = vst [vmem:[#allocation62_spill] sm:$0xff] %v3017_v8  ;;  %v851_v8 = vmul.f32 %v2593_v15, %v2610_v22 }
 0x102   : > { %3510 = vst [vmem:[#allocation63_spill] sm:$0xff] %v3023_v40  ;;  %v3039_v40 = vld [vmem:[%s2545_s23 + $0x8] sm:$0xf] }
 0x104   : > { %1062 = vrot.lane.b32.xlu0 %v1054_v41, %s2322_s27  ;;  %1038 = vrot.lane.b32.xlu2 %v1030_v42, %s2322_s27  ;;  %v718_v41 = vmul.f32 %v2920_v37, %v2613_v23  ;;  %v975_v42 = vmul.f32 %v2689_v48, %v2610_v22  ;;  %v742_v23 = vmul.f32 %v2786_v19, %v2621_v25 }
 0x105   : > { %v999_v48 = vmul.f32 %v2593_v15, %v2624_v26  ;;  %v3047_v25 = vmul.f32 %v580_v55, %v3039_v40 }
 0x106   : > { %670 = vrot.lane.b32.xlu1 %v662_v0, %s2322_s27  ;;  %v3014_v0 = vmul.f32 %v2920_v37, %v2650_v35 }
 0x10c   : > { %726 = vrot.lane.b32.xlu0 %v718_v41, %s2322_s27  ;;  %984 = vrot.lane.b32.xlu2 %v975_v42, %s2322_s27  ;;  %v3050_v41 = vmul.f32 %v580_v55, %v2650_v35  ;;  %v3053_v42 = vmul.f32 %v580_v55, %v2884_v43 }
 0x10e   : > { %898 = vrot.lane.b32.xlu1 %v890_v14, %s2322_s27  ;;  %v3044_v14 = vmul.f32 %v2920_v37, %v2840_v27  ;;  %3511 = vst [vmem:[#allocation64_spill] sm:$0xff] %v3050_v41  ;;  %v1031_v41 = vmul.f32 %v2920_v37, %v2604_v20 }
 0x10f   : > { %3512 = vst [vmem:[#allocation65_spill] sm:$0xff] %v3053_v42  ;;  %v3074_v42 = vpop.permute.xlu2 %643 }
 0x114   : > { %750 = vrot.lane.b32.xlu0 %v742_v23, %s2322_s27  ;;  %1008 = vrot.lane.b32.xlu2 %v999_v48, %s2322_s27  ;;  %v3056_v23 = vmul.f32 %v580_v55, %v2840_v27  ;;  %v1110_v48 = vmul.f32 %v2815_v60, %v2624_v26  ;;  %v930_v55 = vmul.f32 %v2815_v60, %v2610_v22 }
 0x116   : > { %860 = vrot.lane.b32.xlu1 %v851_v8, %s2322_s27  ;;  %3513 = vst [vmem:[#allocation66_spill] sm:$0xff] %v3056_v23  ;;  %v1086_v8 = vmul.f32 %v2829_v39, %v2610_v22  ;;  %v1055_v23 = vmul.f32 %v2786_v19, %v2647_v34 }
 0x11c   : > { %1118 = vrot.lane.b32.xlu0 %v1110_v48, %s2322_s27  ;;  %672 = vrot.lane.b32.xlu2 %v2709_v53, %s2322_s27  ;;  %v774_v53 = vmul.f32 %v2829_v39, %v2588_v13  ;;  %v687_v48 = vmul.f32 %v2593_v15, %v2633_v29  ;;  %v1000_v13 = vmul.f32 %v2593_v15, %v2636_v30 }
 0x11e   : > { %1094 = vrot.lane.b32.xlu1 %v1086_v8, %s2322_s27 }
 0x124   : > { %986 = vrot.lane.b32.xlu0 %v2713_v54, %s2322_s27  ;;  %1040 = vrot.lane.b32.xlu2 %v1031_v41, %s2322_s27 }
 0x126   : > { %938 = vrot.lane.b32.xlu1 %v930_v55, %s2322_s27  ;;  %v719_v55 = vmul.f32 %v2920_v37, %v2610_v22  ;;  %v1087_v22 = vmul.f32 %v2829_v39, %v2607_v21 }
 0x12c   : > { %782 = vrot.lane.b32.xlu0 %v774_v53, %s2322_s27  ;;  %900 = vrot.lane.b32.xlu2 %v2813_v57, %s2322_s27 }
 0x12d   : > { %v509_v54 = vpop.permute.xlu2 %508 }
 0x12e   : > { %696 = vrot.lane.b32.xlu1 %v687_v48, %s2322_s27  ;;  %v519_v41 = vadd.f32 %v509_v54, %v2738_v62 }
 0x130   : > { %v532_v8 = vadd.f32 %v2719_v56, %v519_v41 }
 0x132   : > { %v545_v53 = vadd.f32 %v2935_v16, %v532_v8  ;;  %v3106_v16 = vpop.permute.xlu0 %634 }
 0x134   : > { %728 = vrot.lane.b32.xlu0 %v719_v55, %s2322_s27  ;;  %1010 = vrot.lane.b32.xlu2 %v1000_v13, %s2322_s27 }
 0x135   : > { %v511_v62 = vpop.permute.xlu2 %510 }
 0x136   : > { %1064 = vrot.lane.b32.xlu1 %v1055_v23, %s2322_s27  ;;  %v520_v56 = vadd.f32 %v511_v62, %v2740_v63 }
 0x138   : > { %v533_v57 = vadd.f32 %v2726_v58, %v520_v56  ;;  %v931_v58 = vmul.f32 %v2815_v60, %v2607_v21 }
 0x13a   : > { %v546_v37 = vadd.f32 %v2947_v33, %v533_v57  ;;  %v798_v33 = vmul.f32 %v2815_v60, %v2633_v29 }
 0x13c   : > { %674 = vrot.lane.b32.xlu0 %v2730_v59, %s2322_s27  ;;  %1096 = vrot.lane.b32.xlu2 %v1087_v22, %s2322_s27 }
 0x13e   : > { %862 = vrot.lane.b32.xlu1 %v2642_v32, %s2322_s27  ;;  %v564_v23 = vpop.permute.xlu2 %563 }
 0x13f   : > { %v574_v48 = vadd.f32 %v564_v23, %v545_v53 }
 0x141   : > { %v587_v63 = vadd.f32 %v2938_v51, %v574_v48 }
 0x143   : > { %v600_v54 = vadd.f32 %v2848_v45, %v587_v63  ;;  %v688_v45 = vmul.f32 %v2593_v15, %v2647_v34 }
 0x144   : > { %1042 = vrot.lane.b32.xlu0 %v2943_v28, %s2322_s27  ;;  %940 = vrot.lane.b32.xlu2 %v931_v58, %s2322_s27  ;;  %v743_v28 = vmul.f32 %v2786_v19, %v2624_v26  ;;  %v1111_v26 = vmul.f32 %v2815_v60, %v2636_v30  ;;  %v1001_v30 = vmul.f32 %v2593_v15, %v2657_v38 }
 0x145   : > { %v513_v32 = vpop.permute.xlu0 %512 }
 0x146   : > { %806 = vrot.lane.b32.xlu1 %v798_v33, %s2322_s27  ;;  %v617_v59 = vpop.permute.xlu2 %616  ;;  %v521_v41 = vadd.f32 %v513_v32, %v2748_v2  ;;  %v507_v51 = vpop.permute.xlu1 %506  ;;  %v3515_v33 = vld [vmem:[#allocation25_spill] sm:$0xff] }
 0x147   : > { %v518_v8 = vadd.f32 %v507_v51, %v2760_v6  ;;  %v1056_v6 = vmul.f32 %v2786_v19, %v2650_v35 }
 0x148   : > { %v534_v21 = vadd.f32 %v2736_v61, %v521_v41 }
 0x149   : > { %v531_v29 = vadd.f32 %v2746_v1, %v518_v8  ;;  %v775_v1 = vmul.f32 %v2829_v39, %v2604_v20 }
 0x14a   : > { %v547_v55 = vadd.f32 %v2965_v49, %v534_v21  ;;  %v3517_v21 = vld [vmem:[#allocation26_spill] sm:$0xff] }
 0x14b   : > { %v544_v2 = vadd.f32 %v2954_v47, %v531_v29 }
 0x14c   : > { %902 = vrot.lane.b32.xlu0 %v2820_v3, %s2322_s27  ;;  %698 = vrot.lane.b32.xlu2 %v688_v45, %s2322_s27  ;;  %v3518_v45 = vld [vmem:[#allocation35_spill] sm:$0xff] }
 0x14e   : > { %752 = vrot.lane.b32.xlu1 %v743_v28, %s2322_s27  ;;  %v623_v61 = vpop.permute.xlu2 %622 }
 0x154   : > { %784 = vrot.lane.b32.xlu0 %v775_v1, %s2322_s27  ;;  %1066 = vrot.lane.b32.xlu2 %v1056_v6, %s2322_s27  ;;  %v3521_v1 = vld [vmem:[#allocation41_spill] sm:$0xff] }
 0x156   : > { %1120 = vrot.lane.b32.xlu1 %v1111_v26, %s2322_s27  ;;  %v566_v3 = vpop.permute.xlu0 %565  ;;  %v859_v49 = vpop.permute.xlu2 %858 }
 0x157   : > { %v575_v47 = vadd.f32 %v566_v3, %v546_v37  ;;  %v870_v13 = vadd.f32 %v859_v49, %v2774_v10  ;;  %v562_v53 = vpop.permute.xlu1 %561  ;;  %v3522_v49 = vld [vmem:[#allocation27_spill] sm:$0xff] }
 0x158   : > { %v573_v62 = vadd.f32 %v562_v53, %v544_v2  ;;  %v3520_v2 = vld [vmem:[#allocation33_spill] sm:$0xff] }
 0x159   : > { %v588_v20 = vadd.f32 %v2950_v44, %v575_v47  ;;  %v878_v56 = vadd.f32 %v2754_v4, %v870_v13 }
 0x15a   : > { %v586_v57 = vadd.f32 %v2957_v31, %v573_v62  ;;  %v3523_v62 = vld [vmem:[#allocation28_spill] sm:$0xff] }
 0x15b   : > { %v601_v22 = vadd.f32 %v2862_v18, %v588_v20  ;;  %v886_v23 = vadd.f32 %v2978_v52, %v878_v56 }
 0x15c   : > { %v599_v48 = vadd.f32 %v2844_v36, %v586_v57  ;;  %730 = vrot.lane.b32.xlu0 %v2961_v9, %s2322_s27  ;;  %1012 = vrot.lane.b32.xlu2 %v1001_v30, %s2322_s27  ;;  %v1112_v57 = vmul.f32 %v2815_v60, %v2657_v38  ;;  %v3524_v30 = vld [vmem:[#allocation56_spill] sm:$0xff] }
 0x15e   : > { %988 = vrot.lane.b32.xlu1 %v2758_v5, %s2322_s27  ;;  %v3155_v4 = vadd.f32 %v617_v59, %v599_v48  ;;  %v619_v10 = vpop.permute.xlu0 %618  ;;  %v1039_v31 = vpop.permute.xlu2 %1038  ;;  %v3514_v5 = vld [vmem:[#allocation24_spill] sm:$0xff]  ;;  %v3526_v48 = vld [vmem:[#allocation34_spill] sm:$0xff] }
 0x15f   : > { %v3157_v44 = vadd.f32 %v619_v10, %v600_v54  ;;  %v568_v37 = vpop.permute.xlu1 %567 }
 0x160   : > { %v576_v18 = vadd.f32 %v568_v37, %v547_v55 }
 0x162   : > { %v589_v52 = vadd.f32 %v2967_v50, %v576_v18 }
 0x164   : > { %v602_v36 = vadd.f32 %v2852_v17, %v589_v52  ;;  %676 = vrot.lane.b32.xlu0 %v2764_v7, %s2322_s27  ;;  %1098 = vrot.lane.b32.xlu2 %v2856_v46, %s2322_s27  ;;  %v932_v17 = vmul.f32 %v2815_v60, %v2618_v24  ;;  %v799_v7 = vmul.f32 %v2815_v60, %v2647_v34  ;;  %v3516_v46 = vld [vmem:[#allocation55_spill] sm:$0xff]  ;;  %v3519_v34 = vld [vmem:[#allocation40_spill] sm:$0xff] }
 0x165   : > { %v689_v24 = vmul.f32 %v2593_v15, %v2650_v35 }
 0x166   : > { %864 = vrot.lane.b32.xlu1 %v3514_v5, %s2322_s27  ;;  %v3167_v9 = vadd.f32 %v623_v61, %v602_v36  ;;  %v1007_v63 = vpop.permute.xlu0 %1006  ;;  %v985_v58 = vpop.permute.xlu2 %984  ;;  %v3527_v5 = vld [vmem:[#allocation57_spill] sm:$0xff] }
 0x167   : > { %v995_v54 = vadd.f32 %v985_v58, %v3515_v33  ;;  %v1089_v58 = vmul.f32 %v2829_v39, %v3039_v40  ;;  %v1057_v33 = vmul.f32 %v2786_v19, %v2840_v27 }
 0x168   : > { %v621_v32 = vpop.permute.xlu1 %620 }
 0x169   : > { %v3170_v59 = vadd.f32 %v621_v32, %v601_v22  ;;  %v3525_v22 = vld [vmem:[#allocation43_spill] sm:$0xff] }
 0x16c   : > { %1044 = vrot.lane.b32.xlu0 %v3516_v46, %s2322_s27  ;;  %942 = vrot.lane.b32.xlu2 %v932_v17, %s2322_s27 }
 0x16e   : > { %808 = vrot.lane.b32.xlu1 %v799_v7, %s2322_s27  ;;  %v695_v50 = vpop.permute.xlu0 %694  ;;  %v1009_v41 = vpop.permute.xlu2 %1008 }
 0x16f   : > { %v1019_v51 = vadd.f32 %v1009_v41, %v995_v54  ;;  %v3528_v54 = vld [vmem:[#allocation45_spill] sm:$0xff] }
 0x170   : > { %v983_v8 = vpop.permute.xlu1 %982 }
 0x171   : > { %v994_v29 = vadd.f32 %v983_v8, %v3517_v21  ;;  %v1027_v28 = vadd.f32 %v3518_v45, %v1019_v51  ;;  %v3530_v51 = vld [vmem:[#allocation59_spill] sm:$0xff]  ;;  %v3531_v8 = vld [vmem:[#allocation36_spill] sm:$0xff]  ;;  %v3532_v45 = vld [vmem:[#allocation58_spill] sm:$0xff] }
 0x173   : > { %v1018_v55 = vadd.f32 %v1007_v63, %v994_v29  ;;  %v745_v63 = vmul.f32 %v2786_v19, %v2657_v38  ;;  %v3529_v38 = vld [vmem:[#allocation42_spill] sm:$0xff]  ;;  %v1113_v19 = vmul.f32 %v2815_v60, %v2884_v43  ;;  %v800_v29 = vmul.f32 %v2815_v60, %v2650_v35 }
 0x174   : > { %904 = vrot.lane.b32.xlu0 %v3519_v34, %s2322_s27  ;;  %700 = vrot.lane.b32.xlu2 %v689_v24, %s2322_s27  ;;  %v933_v35 = vmul.f32 %v2815_v60, %v3039_v40 }
 0x175   : > { %v1026_v61 = vadd.f32 %v3520_v2, %v1018_v55  ;;  %v3533_v55 = vld [vmem:[#allocation44_spill] sm:$0xff] }
 0x176   : > { %754 = vrot.lane.b32.xlu1 %v3521_v1, %s2322_s27  ;;  %v1063_v6 = vpop.permute.xlu0 %1062  ;;  %v673_v3 = vpop.permute.xlu2 %672  ;;  %v3534_v1 = vld [vmem:[#allocation60_spill] sm:$0xff] }
 0x177   : > { %v1050_v26 = vadd.f32 %v1039_v31, %v1026_v61  ;;  %v683_v47 = vadd.f32 %v673_v3, %v3522_v49 }
 0x178   : > { %v671_v13 = vpop.permute.xlu1 %670 }
 0x179   : > { %v1074_v53 = vadd.f32 %v1063_v6, %v1050_v26  ;;  %v682_v20 = vadd.f32 %v671_v13, %v3523_v62  ;;  %v3535_v26 = vld [vmem:[#allocation46_spill] sm:$0xff]  ;;  %v3536_v13 = vld [vmem:[#allocation29_spill] sm:$0xff] }
 0x17b   : > { %v706_v15 = vadd.f32 %v695_v50, %v682_v20  ;;  %v1082_v56 = vadd.f32 %v2997_v11, %v1074_v53 }
 0x17c   : > { %732 = vrot.lane.b32.xlu0 %v3524_v30, %s2322_s27  ;;  %786 = vrot.lane.b32.xlu2 %v3525_v22, %s2322_s27 }
 0x17d   : > { %v714_v10 = vadd.f32 %v3526_v48, %v706_v15  ;;  %v801_v15 = vmul.f32 %v2815_v60, %v2840_v27 }
 0x17e   : > { %1122 = vrot.lane.b32.xlu1 %v1112_v57, %s2322_s27  ;;  %v727_v31 = vpop.permute.xlu0 %726  ;;  %v1041_v37 = vpop.permute.xlu2 %1040  ;;  %v3537_v57 = vld [vmem:[#allocation39_spill] sm:$0xff] }
 0x17f   : > { %v1051_v18 = vadd.f32 %v1041_v37, %v1027_v28  ;;  %v738_v17 = vadd.f32 %v727_v31, %v714_v10  ;;  %v3538_v37 = vld [vmem:[#allocation37_spill] sm:$0xff] }
 0x180   : > { %v899_v52 = vpop.permute.xlu1 %898 }
 0x181   : > { %v910_v36 = vadd.f32 %v899_v52, %v886_v23 }
 0x183   : > { %v918_v11 = vadd.f32 %v3527_v5, %v910_v36 }
 0x184   : > { %756 = vrot.lane.b32.xlu0 %v745_v63, %s2322_s27  ;;  %1100 = vrot.lane.b32.xlu2 %v1089_v58, %s2322_s27 }
 0x185   : > { %v926_v32 = vadd.f32 %v3528_v54, %v918_v11 }
 0x186   : > { %1068 = vrot.lane.b32.xlu1 %v1057_v33, %s2322_s27  ;;  %v751_v23 = vpop.permute.xlu0 %750  ;;  %v901_v7 = vpop.permute.xlu2 %900 }
 0x187   : > { %v762_v46 = vadd.f32 %v751_v23, %v738_v17  ;;  %v3539_v23 = vld [vmem:[#allocation61_spill] sm:$0xff] }
 0x188   : > { %v861_v50 = vpop.permute.xlu1 %860 }
 0x189   : > { %v871_v41 = vadd.f32 %v861_v50, %v3529_v38  ;;  %v770_v39 = vadd.f32 %v3530_v51, %v762_v46  ;;  %v3540_v38 = vld [vmem:[#allocation30_spill] sm:$0xff] }
 0x18b   : > { %v879_v21 = vadd.f32 %v3531_v8, %v871_v41  ;;  %v3541_v8 = vld [vmem:[#allocation47_spill] sm:$0xff] }
 0x18c   : > { %788 = vrot.lane.b32.xlu0 %v3533_v55, %s2322_s27  ;;  %1124 = vrot.lane.b32.xlu2 %v1113_v19, %s2322_s27  ;;  %v3543_v55 = vld [vmem:[#allocation49_spill] sm:$0xff] }
 0x18d   : > { %v887_v28 = vadd.f32 %v3532_v45, %v879_v21  ;;  %v3542_v45 = vld [vmem:[#allocation38_spill] sm:$0xff] }
 0x18e   : > { %810 = vrot.lane.b32.xlu1 %v800_v29, %s2322_s27  ;;  %v1119_v24 = vpop.permute.xlu0 %1118  ;;  %v1011_v34 = vpop.permute.xlu2 %1010 }
 0x18f   : > { %v911_v2 = vadd.f32 %v901_v7, %v887_v28 }
 0x190   : > { %v1095_v61 = vpop.permute.xlu1 %1094 }
 0x191   : > { %v919_v6 = vadd.f32 %v3534_v1, %v911_v2  ;;  %v1106_v36 = vadd.f32 %v1095_v61, %v1082_v56 }
 0x193   : > { %v927_v43 = vadd.f32 %v3535_v26, %v919_v6  ;;  %v1130_v54 = vadd.f32 %v1119_v24, %v1106_v36 }
 0x195   : > { %v1134_v46 = vmul.f32 %v1130_v54, %v3106_v16 }
 0x196   : > { %944 = vrot.lane.b32.xlu1 %v933_v35, %s2322_s27  ;;  %v987_v3 = vpop.permute.xlu0 %986  ;;  %v3229_v49 = vpop.permute.xlu2 %1096 }
 0x197   : > { %v996_v53 = vadd.f32 %v987_v3, %v3536_v13 }
 0x198   : > { %v939_v62 = vpop.permute.xlu1 %938 }
 0x199   : > { %v1020_v20 = vadd.f32 %v1011_v34, %v996_v53  ;;  %v950_v5 = vadd.f32 %v939_v62, %v926_v32  ;;  %v638_v34 = vmul.f32 %v3106_v16, %v3157_v44 }
 0x19b   : > { %v1028_v30 = vadd.f32 %v3537_v57, %v1020_v20  ;;  %v954_v27 = vmul.f32 %v950_v5, %v3106_v16  ;;  %v647_v13 = vadd.f32 %v3074_v42, %v638_v34  ;;  %v3546_v5 = vld [vmem:[#allocation48_spill] sm:$0xff] }
 0x19d   : > { %v958_v50 = vadd.f32 %v954_v27, %v3074_v42  ;;  %v637_v27 = vmul.f32 %v3106_v16, %v3155_v4 }
 0x19e   : > { %812 = vrot.lane.b32.xlu1 %v801_v15, %s2322_s27  ;;  %v783_v22 = vpop.permute.xlu0 %782  ;;  %v941_v48 = vpop.permute.xlu2 %940  ;;  %v651_v15 = vmax.f32 %v647_v13, 0.0  ;;  %s3562_s27 = sld [smem:[#allocation70_spill]] }
 0x19f   : > { %v951_v40 = vadd.f32 %v941_v48, %v927_v43  ;;  %v962_v19 = vmax.f32 %v958_v50, 0.0  ;;  %v794_v1 = vadd.f32 %v783_v22, %v770_v39 }
 0x1a0   : > { %v697_v10 = vpop.permute.xlu1 %696 }
 0x1a1   : > { %v707_v31 = vadd.f32 %v697_v10, %v683_v47  ;;  %v955_v11 = vmul.f32 %v951_v40, %v3106_v16  ;;  %v3544_v40 = vld [vmem:[#allocation62_spill] sm:$0xff] }
 0x1a3   : > { %v715_v52 = vadd.f32 %v3538_v37, %v707_v31  ;;  %v959_v17 = vadd.f32 %v955_v11, %v3074_v42  ;;  %v3545_v37 = vld [vmem:[#allocation63_spill] sm:$0xff] }
 0x1a4   : > { %s3563_s19 = smov %s3562_s27 }
 0x1a5   : > { %v963_v47 = vmax.f32 %v959_v17, 0.0  ;;  %s2205_s6 = scalar_lea.hbm %s3563_s19, 128 }
 0x1a6   : > { %v729_v63 = vpop.permute.xlu0 %728  ;;  %v699_v58 = vpop.permute.xlu2 %698 }
 0x1a7   : > { %v739_v57 = vadd.f32 %v729_v63, %v715_v52 }
 0x1a8   : > { %v1065_v33 = vpop.permute.xlu1 %1064 }
 0x1a9   : > { %v1075_v60 = vadd.f32 %v1065_v33, %v1051_v18  ;;  %v1138_v18 = vadd.f32 %v1134_v46, %v3074_v42 }
 0x1ab   : > { %v1083_v7 = vadd.f32 %v3539_v23, %v1075_v60  ;;  %v1142_v2 = vmax.f32 %v1138_v18, 0.0 }
 0x1ad   : > { %v1107_v33 = vadd.f32 %v3229_v49, %v1083_v7  ;;  %v3547_v7 = vld [vmem:[#allocation31_spill] sm:$0xff] }
 0x1ae   : > { %v675_v56 = vpop.permute.xlu0 %674  ;;  %v1067_v32 = vpop.permute.xlu2 %1066  ;;  %1434 = vxpose.xlu0.b32.start.end [1/1] (short) (narrow) %v963_v47, 8  ;;  %v646_v47 = vadd.f32 %v3074_v42, %v637_v27 }
 0x1af   : > { %v684_v41 = vadd.f32 %v675_v56, %v3540_v38 }
 0x1b0   : > { %v863_v51 = vpop.permute.xlu1 %862 }
 0x1b1   : > { %v872_v21 = vadd.f32 %v863_v51, %v3541_v8  ;;  %v708_v29 = vadd.f32 %v699_v58, %v684_v41  ;;  %v650_v41 = vmax.f32 %v646_v47, 0.0  ;;  %v3548_v51 = vld [vmem:[#allocation51_spill] sm:$0xff]  ;;  %v3555_v47 = vld [vmem:[#allocation66_spill] sm:$0xff] }
 0x1b2   : > { %1402 = vxpose.xlu2.b32.start.end [1/1] (short) (narrow) %v962_v19, 8  ;;  %v3549_v19 = vld [vmem:[#allocation32_spill] sm:$0xff] }
 0x1b3   : > { %v880_v28 = vadd.f32 %v3542_v45, %v872_v21  ;;  %v3248_v24 = vadd.f32 %v3543_v55, %v708_v29 }
 0x1b5   : > { %v888_v61 = vadd.f32 %v3014_v0, %v880_v28  ;;  %v3550_v28 = vld [vmem:[#allocation54_spill] sm:$0xff] }
 0x1b6   : > { %v1043_v6 = vpop.permute.xlu0 %1042  ;;  %v1013_v26 = vpop.permute.xlu2 %1012  ;;  %1530 = vxpose.xlu0.b32.start.end [1/1] (short) (narrow) %v1142_v2, 8  ;;  %v3551_v2 = vld [vmem:[#allocation50_spill] sm:$0xff] }
 0x1b7   : > { %v1052_v43 = vadd.f32 %v1043_v6, %v1028_v30 }
 0x1b8   : > { %v807_v35 = vpop.permute.xlu1 %806 }
 0x1b9   : > { %v818_v3 = vadd.f32 %v807_v35, %v794_v1  ;;  %v1076_v53 = vadd.f32 %v1067_v32, %v1052_v43  ;;  %v3552_v1 = vld [vmem:[#allocation52_spill] sm:$0xff] }
 0x1bb   : > { %v822_v62 = vmul.f32 %v818_v3, %v3106_v16  ;;  %v3256_v20 = vadd.f32 %v3020_v12, %v1076_v53 }
 0x1bd   : > { %v826_v44 = vadd.f32 %v822_v62, %v3074_v42 }
 0x1be   : > { %v903_v0 = vpop.permute.xlu0 %902  ;;  %v1099_v39 = vpop.permute.xlu2 %1098  ;;  %1178 = vxpose.xlu0.b32.start.end [1/1] (short) (narrow) %v651_v15, 8  ;;  %v639_v15 = vmul.f32 %v3106_v16, %v3170_v59 }
 0x1bf   : > { %v830_v22 = vmax.f32 %v826_v44, 0.0  ;;  %v912_v48 = vadd.f32 %v903_v0, %v888_v61 }
 0x1c0   : > { %v753_v30 = vpop.permute.xlu1 %752 }
 0x1c1   : > { %v763_v10 = vadd.f32 %v753_v30, %v739_v57  ;;  %1274 = vxpose.xlu2.b32.start.end [1/1] (short) (narrow) %v830_v22, 8  ;;  %v920_v31 = vadd.f32 %v3544_v40, %v912_v48  ;;  %v3553_v40 = vld [vmem:[#allocation64_spill] sm:$0xff] }
 0x1c3   : > { %v771_v36 = vadd.f32 %v3545_v37, %v763_v10  ;;  %v928_v11 = vadd.f32 %v3546_v5, %v920_v31  ;;  %v648_v37 = vadd.f32 %v3074_v42, %v639_v15 }
 0x1c6   : > { %v785_v12 = vpop.permute.xlu0 %784  ;;  %v943_v58 = vpop.permute.xlu2 %942 }
 0x1c7   : > { %v952_v54 = vadd.f32 %v943_v58, %v928_v11  ;;  %v795_v35 = vadd.f32 %v785_v12, %v771_v36  ;;  %v3554_v36 = vld [vmem:[#allocation53_spill] sm:$0xff]  ;;  %v1108_v11 = vadd.f32 %v1099_v39, %v3256_v20  ;;  %v652_v12 = vmax.f32 %v648_v37, 0.0 }
 0x1c8   : > { %v1121_v52 = vpop.permute.xlu1 %1120  ;;  %v3556_v39 = vld [vmem:[#allocation65_spill] sm:$0xff] }
 0x1c9   : > { %v1131_v63 = vadd.f32 %v1121_v52, %v1107_v33  ;;  %v956_v60 = vmul.f32 %v952_v54, %v3106_v16 }
 0x1cb   : > { %v1135_v17 = vmul.f32 %v1131_v63, %v3106_v16  ;;  %v960_v23 = vadd.f32 %v956_v60, %v3074_v42 }
 0x1cd   : > { %v1139_v46 = vadd.f32 %v1135_v17, %v3074_v42  ;;  %v964_v50 = vmax.f32 %v960_v23, 0.0 }
 0x1ce   : > { %v731_v56 = vpop.permute.xlu0 %730  ;;  %v701_v45 = vpop.permute.xlu2 %700 }
 0x1cf   : > { %v1143_v32 = vmax.f32 %v1139_v46, 0.0  ;;  %1466 = vxpose.xlu0.b32.start.end [1/1] (short) (narrow) %v964_v50, 8  ;;  %v740_v44 = vadd.f32 %v731_v56, %v3248_v24 }
 0x1d0   : > { %v989_v49 = vpop.permute.xlu1 %988 }
 0x1d1   : > { %v997_v38 = vadd.f32 %v989_v49, %v3547_v7  ;;  %1562 = vxpose.xlu2.b32.start.end [1/1] (short) (narrow) %v1143_v32, 8 }
 0x1d3   : > { %v1021_v4 = vadd.f32 %v1013_v26, %v997_v38  ;;  %1146 = vxpose.xlu1.b32.start.end [1/1] (short) (narrow) %v650_v41, 8 }
 0x1d5   : > { %v1029_v8 = vadd.f32 %v3548_v51, %v1021_v4 }
 0x1d6   : > { %v677_v21 = vpop.permute.xlu0 %676 }
 0x1d7   : > { %v685_v18 = vadd.f32 %v677_v21, %v3549_v19 }
 0x1d8   : > { %v865_v29 = vpop.permute.xlu1 %864 }
 0x1d9   : > { %v873_v55 = vadd.f32 %v865_v29, %v3550_v28  ;;  %v709_v34 = vadd.f32 %v701_v45, %v685_v18  ;;  %v640_v29 = vmul.f32 %v3106_v16, %v3167_v9 }
 0x1db   : > { %v881_v61 = vadd.f32 %v3551_v2, %v873_v55  ;;  %v717_v6 = vadd.f32 %v3552_v1, %v709_v34  ;;  %v649_v34 = vadd.f32 %v3074_v42, %v640_v29 }
 0x1dd   : > { %v889_v43 = vadd.f32 %v3044_v14, %v881_v61  ;;  %v787_v14 = vpop.permute.xlu2 %786 }
 0x1de   : > { %v1045_v3 = vpop.permute.xlu0 %1044 }
 0x1e0   : > { %v809_v26 = vpop.permute.xlu1 %808 }
 0x1e1   : > { %v819_v13 = vadd.f32 %v809_v26, %v795_v35 }
 0x1e3   : > { %v823_v53 = vmul.f32 %v819_v13, %v3106_v16 }
 0x1e5   : > { %v827_v62 = vadd.f32 %v823_v53, %v3074_v42  ;;  %v1101_v54 = vpop.permute.xlu2 %1100  ;;  %v1658_v53 = vld [vmem:[%s3557_s22] sm:$0xf]  ;;  %s1864_s22 = scalar_lea.hbm %s3562_s27, %s2028_s30 }
 0x1e6   : > { %v905_v57 = vpop.permute.xlu0 %904  ;;  %2038 = vmatpush.msk.msra.mxu2 %vm1708_vm0, %v1658_v53  ;;  %2039 = vmatpush.msk.msra.mxu3 %vm1708_vm0, %v1658_v53  ;;  %s1867_s7 = sshll.u32 %s1864_s22, 4  ;;  %s1868_s7 = int_to_ptr.hbm [resolvable:$true] %s1867_s7 }
 0x1e7   : > { %v831_v0 = vmax.f32 %v827_v62, 0.0  ;;  %v913_v22 = vadd.f32 %v905_v57, %v889_v43  ;;  %2008 = vmatpush.msk.msra.mxu0 %vm1708_vm0, %v1658_v53  ;;  %2037 = vmatpush.msk.msra.mxu1 %vm1708_vm0, %v1658_v53  ;;  %s2199_s10 = sshra.s32 %s1868_s7, 4  ;;  %s2200_s10 = int_to_ptr.hbm [resolvable:$true] %s2199_s10 }
 0x1e8   : > { %v755_v48 = vpop.permute.xlu1 %754  ;;  %s2201_s5 = scalar_lea.hbm %s2200_s10, 32  ;;  %p2206_p11 = scmp.lt.s32.totalorder %s2200_s10, %s3563_s19 }
 0x1e9   : > { %v764_v30 = vadd.f32 %v755_v48, %v740_v44  ;;  %1306 = vxpose.xlu2.b32.start.end [1/1] (short) (narrow) %v831_v0, 8  ;;  %v921_v10 = vadd.f32 %v3047_v25, %v913_v22  ;;  %v1053_v25 = vadd.f32 %v1045_v3, %v1029_v8  ;;  %p2202_p6 = scmp.ne.s32.totalorder %s2200_s10, %s2201_s5  ;;  %p2207_p12 = scmp.lt.s32.totalorder %s2205_s6, %s2201_s5 }
 0x1eb   : > { %v772_v31 = vadd.f32 %v3553_v40, %v764_v30  ;;  %v929_v5 = vadd.f32 %v3554_v36, %v921_v10  ;;  %p2203_p7 = pnand %p2202_p6, %p2501_p4  ;;  %p2208_p13 = por %p2207_p12, %p2206_p11 }
 0x1ed   : > { %v1125_v32 = vpop.permute.xlu2 %1124  ;;  %v796_v7 = vadd.f32 %v787_v14, %v772_v31  ;;  %p2204_p10 = pneg %p2203_p7 }
 0x1ee   : > { %v733_v59 = vpop.permute.xlu0 %732 }
 0x1ef   : > { %v741_v63 = vadd.f32 %v733_v59, %v717_v6  ;;  %v653_v6 = vmax.f32 %v649_v34, 0.0  ;;  %p2209_p0 = pnand %p2208_p13, %p2204_p10 }
 0x1f0   : > { %v1123_v24 = vpop.permute.xlu1 %1122 }
 0x1f1   : > { %v1132_v58 = vadd.f32 %v1123_v24, %v1108_v11  ;;  %1210 = vxpose.xlu2.b32.start.end [1/1] (short) (narrow) %v652_v12, 8  ;;  %v3329_v12 = vld [vmem:[%s3559_s12] ss:$0 sm:$0xff] }
 0x1f3   : > { %v1136_v33 = vmul.f32 %v1132_v58, %v3106_v16 }
 0x1f5   : > { %v1140_v52 = vadd.f32 %v1136_v33, %v3074_v42 }
 0x1f6   : > { %v757_v27 = vpop.permute.xlu0 %756 }
 0x1f7   : > { %v1144_v60 = vmax.f32 %v1140_v52, 0.0  ;;  %v765_v17 = vadd.f32 %v757_v27, %v741_v63 }
 0x1f8   : > { %v1069_v23 = vpop.permute.xlu1 %1068 }
 0x1f9   : > { %v1077_v46 = vadd.f32 %v1069_v23, %v1053_v25  ;;  %1594 = vxpose.xlu1.b32.start.end [1/1] (short) (narrow) %v1144_v60, 8  ;;  %v773_v20 = vadd.f32 %v3555_v47, %v765_v17 }
 0x1fb   : > { %v1085_v50 = vadd.f32 %v3556_v39, %v1077_v46 }
 0x1fd   : > { %v1109_v56 = vadd.f32 %v1101_v54, %v1085_v50 }
 0x1fe   : > { %v789_v2 = vpop.permute.xlu0 %788 }
 0x1ff   : > { %v1133_v49 = vadd.f32 %v1125_v32, %v1109_v56  ;;  %v797_v1 = vadd.f32 %v789_v2, %v773_v20 }
 0x200   : > { %v811_v38 = vpop.permute.xlu1 %810 }
 0x201   : > { %v820_v41 = vadd.f32 %v811_v38, %v796_v7  ;;  %v1137_v4 = vmul.f32 %v1133_v49, %v3106_v16 }
 0x203   : > { %v824_v51 = vmul.f32 %v820_v41, %v3106_v16  ;;  %v1141_v8 = vadd.f32 %v1137_v4, %v3074_v42 }
 0x205   : > { %v1145_v21 = vmax.f32 %v1141_v8, 0.0  ;;  %v828_v19 = vadd.f32 %v824_v51, %v3074_v42 }
 0x207   : > { %1626 = vxpose.xlu2.b32.start.end [1/1] (short) (narrow) %v1145_v21, 8  ;;  %v832_v18 = vmax.f32 %v828_v19, 0.0 }
 0x208   : > { %v945_v45 = vpop.permute.xlu1 %944 }
 0x209   : > { %v953_v28 = vadd.f32 %v945_v45, %v929_v5  ;;  %1338 = vxpose.xlu0.b32.start.end [1/1] (short) (narrow) %v832_v18, 8  ;;  %v3324_v5 = vld [vmem:[%s3558_s11] ss:$0 sm:$0xff]  ;;  %s1851_s11 = scalar_lea.sflag [#allocation4], %s2534_s24 }
 0x20b   : > { %v957_v55 = vmul.f32 %v953_v28, %v3106_v16 }
 0x20d   : > { %v961_v61 = vadd.f32 %v957_v55, %v3074_v42 }
 0x20f   : > { %v965_v43 = vmax.f32 %v961_v61, 0.0 }
 0x210   : > { %v813_v35 = vpop.permute.xlu1 %812 }
 0x211   : > { %v821_v3 = vadd.f32 %v813_v35, %v797_v1  ;;  %1242 = vxpose.xlu0.b32.start.end [1/1] (short) (narrow) %v653_v6, 8  ;;  %1498 = vxpose.xlu1.b32.start.end [1/1] (short) (narrow) %v965_v43, 8 }
 0x213   : > { %v825_v26 = vmul.f32 %v821_v3, %v3106_v16 }
 0x215   : > { %v829_v9 = vadd.f32 %v825_v26, %v3074_v42 }
 0x217   : > { %v833_v13 = vmax.f32 %v829_v9, 0.0 }
 0x219   : > { %1370 = vxpose.xlu1.b32.start.end [1/1] (short) (narrow) %v833_v13, 8 }
 0x24b   : > { %v1418_v62 = vpop.trf.xlu2 }
 0x24c   : > { %2017 = vmatmul.msk.f32.vlgmr.msra.gmra.mxu2 %vm1659_vm1, %v1418_v62 }
 0x252   : > { %v1450_v15 = vpop.trf.xlu0 }
 0x254   : > { %2018 = vmatmul.msk.f32.gmra.mxu2 %vm1659_vm1, %v1450_v15 }
 0x25a   : > { %v1290_v16 = vpop.trf.xlu2  ;;  %v1546_v42 = vpop.trf.xlu0 }
 0x25b   : > { %2013 = vmatmul.msk.f32.vlgmr.msra.gmra.mxu1 %vm1659_vm1, %v1290_v16  ;;  %2021 = vmatmul.msk.f32.vlgmr.msra.gmra.mxu3 %vm1659_vm1, %v1546_v42 }
 0x262   : > { %v1194_v57 = vpop.trf.xlu0 }
 0x26a   : > { %v1578_v44 = vpop.trf.xlu2 }
 0x26b   : > { %2022 = vmatmul.msk.f32.gmra.mxu3 %vm1659_vm1, %v1578_v44 }
 0x273   : > { %v1482_v0 = vpop.trf.xlu0 }
 0x274   : > { %2019 = vmatmul.msk.f32.gmra.mxu2 %vm1659_vm1, %v1482_v0 }
 0x277   : > { %v1162_v22 = vpop.trf.xlu1 }
 0x278   : > { %2009 = vmatmul.msk.f32.vlgmr.msra.gmra.mxu0 %vm1659_vm1, %v1162_v22 }
 0x280   : > { %2010 = vmatmul.msk.f32.gmra.mxu0 %vm1659_vm1, %v1194_v57 }
 0x282   : > { %v1322_v48 = vpop.trf.xlu2 }
 0x283   : > { %2014 = vmatmul.msk.f32.gmra.mxu1 %vm1659_vm1, %v1322_v48 }
 0x28a   : > { %v1226_v30 = vpop.trf.xlu2 }
 0x28b   : > { %2011 = vmatmul.msk.f32.gmra.mxu0 %vm1659_vm1, %v1226_v30 }
 0x29d   : > { %v1610_v14 = vpop.trf.xlu1 }
 0x29e   : > { %2023 = vmatmul.msk.f32.gmra.mxu3 %vm1659_vm1, %v1610_v14 }
 0x2a0   : > { %v1642_v10 = vpop.trf.xlu2 }
 0x2a6   : > { %2024 = vmatmul.msk.f32.gmra.mxu3 %vm1659_vm1, %v1642_v10 }
 0x2ad   : > { %v1354_v40 = vpop.trf.xlu0 }
 0x2ae   : > { %2015 = vmatmul.msk.f32.gmra.mxu1 %vm1659_vm1, %v1354_v40 }
 0x2b5   : > { %v1514_v31 = vpop.trf.xlu1  ;;  %v1258_v37 = vpop.trf.xlu0 }
 0x2b6   : > { %2020 = vmatmul.msk.f32.gmra.mxu2 %vm1659_vm1, %v1514_v31  ;;  %2012 = vmatmul.msk.f32.gmra.mxu0 %vm1659_vm1, %v1258_v37 }
 0x2bd   : > { %v1386_v36 = vpop.trf.xlu1 }
 0x2be   : > { %2016 = vmatmul.msk.f32.gmra.mxu1 %vm1659_vm1, %v1386_v36 }
 0x2cf   : > { %v1753_v11 = vpop.f32.mrf.mxu2 }
 0x2d0   : > { %v1789_v24 = vmul.f32 %v3324_v5, %v1753_v11 }
 0x2d2   : > { %v1809_v52 = vadd.f32 %v3329_v12, %v1789_v24 }
 0x2d4   : > { %v1825_v17 = vmax.f32 %v1809_v52, 0.0 }
 0x2d7   : > { %v1756_v46 = vpop.f32.mrf.mxu2 }
 0x2d8   : > { %v1741_v33 = vpop.f32.mrf.mxu1  ;;  %v1790_v50 = vmul.f32 %v3324_v5, %v1756_v46 }
 0x2d9   : > { %v1785_v54 = vmul.f32 %v3324_v5, %v1741_v33 }
 0x2da   : > { %v1810_v41 = vadd.f32 %v3329_v12, %v1790_v50 }
 0x2db   : > { %v1805_v25 = vadd.f32 %v3329_v12, %v1785_v54 }
 0x2dc   : > { %v1826_v29 = vmax.f32 %v1810_v41, 0.0 }
 0x2dd   : > { %v1821_v39 = vmax.f32 %v1805_v25, 0.0 }
 0x2de   : > { %v1765_v59 = vpop.f32.mrf.mxu3 }
 0x2df   : > { %v1793_v58 = vmul.f32 %v3324_v5, %v1765_v59 }
 0x2e1   : > { %v1813_v63 = vadd.f32 %v3329_v12, %v1793_v58 }
 0x2e3   : > { %v1829_v23 = vmax.f32 %v1813_v63, 0.0 }
 0x2e5   : > { %v1837_v49 = vmax.f32 %v1825_v17, %v1829_v23 }
 0x2ee   : > { %v1768_v47 = vpop.f32.mrf.mxu3 }
 0x2ef   : > { %v1794_v56 = vmul.f32 %v3324_v5, %v1768_v47 }
 0x2f1   : > { %v1814_v4 = vadd.f32 %v3329_v12, %v1794_v56 }
 0x2f3   : > { %v1830_v45 = vmax.f32 %v1814_v4, 0.0 }
 0x2f5   : > { %v1729_v27 = vpop.f32.mrf.mxu0  ;;  %v1838_v2 = vmax.f32 %v1826_v29, %v1830_v45 }
 0x2f6   : > { %v1781_v60 = vmul.f32 %v3324_v5, %v1729_v27 }
 0x2f7   : > { %v1759_v6 = vpop.f32.mrf.mxu2 }
 0x2f8   : > { %v1801_v20 = vadd.f32 %v3329_v12, %v1781_v60  ;;  %v1791_v3 = vmul.f32 %v3324_v5, %v1759_v6 }
 0x2fa   : > { %v1817_v32 = vmax.f32 %v1801_v20, 0.0  ;;  %v1811_v13 = vadd.f32 %v3329_v12, %v1791_v3 }
 0x2fc   : > { %v1833_v7 = vmax.f32 %v1817_v32, %v1821_v39  ;;  %v1827_v42 = vmax.f32 %v1811_v13, 0.0 }
 0x2fd   : > { %v1732_v38 = vpop.f32.mrf.mxu0 }
 0x2fe   : > { %v1841_v51 = vmax.f32 %v1833_v7, %v1837_v49  ;;  %v1782_v8 = vmul.f32 %v3324_v5, %v1732_v38 }
 0x300   : > { %1846 = vst.msk [vmem:[%s3345_s16] sm:$0xff] %vm1845_vm2, %v1841_v51  ;;  %v1802_v21 = vadd.f32 %v3329_v12, %v1782_v8  ;;  %v1744_v19 = vpop.f32.mrf.mxu1 }
 0x301   : > { %v1786_v18 = vmul.f32 %v3324_v5, %v1744_v19 }
 0x302   : > { %v1818_v28 = vmax.f32 %v1802_v21, 0.0 }
 0x303   : > { %v1806_v55 = vadd.f32 %v3329_v12, %v1786_v18 }
 0x305   : > { %v1822_v34 = vmax.f32 %v1806_v55, 0.0 }
 0x307   : > { %v1834_v61 = vmax.f32 %v1818_v28, %v1822_v34 }
 0x308   : > { %v1735_v35 = vpop.f32.mrf.mxu0 }
 0x309   : > { %v1842_v1 = vmax.f32 %v1834_v61, %v1838_v2  ;;  %v1783_v9 = vmul.f32 %v3324_v5, %v1735_v35 }
 0x30b   : > { %1847 = vst.msk [vmem:[%s3345_s16 + $0x8] sm:$0xff] %vm1845_vm2, %v1842_v1  ;;  %v1803_v62 = vadd.f32 %v3329_v12, %v1783_v9 }
 0x30d   : > { %v1819_v57 = vmax.f32 %v1803_v62, 0.0 }
 0x321   : > { %v1771_v43 = vpop.f32.mrf.mxu3 }
 0x322   : > { %v1795_v26 = vmul.f32 %v3324_v5, %v1771_v43 }
 0x324   : > { %v1815_v53 = vadd.f32 %v3329_v12, %v1795_v26 }
 0x326   : > { %v1831_v44 = vmax.f32 %v1815_v53, 0.0 }
 0x328   : > { %v1839_v48 = vmax.f32 %v1827_v42, %v1831_v44 }
 0x329   : > { %v1774_v14 = vpop.f32.mrf.mxu3 }
 0x32a   : > { %v1796_v31 = vmul.f32 %v3324_v5, %v1774_v14 }
 0x32b   : > { %v1747_v15 = vpop.f32.mrf.mxu1 }
 0x32c   : > { %v1787_v16 = vmul.f32 %v3324_v5, %v1747_v15  ;;  %v1816_v59 = vadd.f32 %v3329_v12, %v1796_v31 }
 0x32e   : > { %v1807_v0 = vadd.f32 %v3329_v12, %v1787_v16  ;;  %v1832_v63 = vmax.f32 %v1816_v59, 0.0 }
 0x330   : > { %v1823_v22 = vmax.f32 %v1807_v0, 0.0 }
 0x332   : > { %v1835_v30 = vmax.f32 %v1819_v57, %v1823_v22 }
 0x333   : > { %v1738_v10 = vpop.f32.mrf.mxu0 }
 0x334   : > { %v1843_v40 = vmax.f32 %v1835_v30, %v1839_v48  ;;  %v1784_v37 = vmul.f32 %v3324_v5, %v1738_v10 }
 0x336   : > { %1848 = vst.msk [vmem:[%s3345_s16 + $0x10] sm:$0xff] %vm1845_vm2, %v1843_v40  ;;  %v1804_v24 = vadd.f32 %v3329_v12, %v1784_v37 }
 0x338   : > { %v1820_v25 = vmax.f32 %v1804_v24, 0.0 }
 0x339   : > { %v1762_v36 = vpop.f32.mrf.mxu2 }
 0x33a   : > { %v1792_v11 = vmul.f32 %v3324_v5, %v1762_v36 }
 0x33b   : > { %v1750_v58 = vpop.f32.mrf.mxu1 }
 0x33c   : > { %v1812_v33 = vadd.f32 %v3329_v12, %v1792_v11  ;;  %v1788_v54 = vmul.f32 %v3324_v5, %v1750_v58 }
 0x33e   : > { %v1828_v52 = vmax.f32 %v1812_v33, 0.0  ;;  %v1808_v27 = vadd.f32 %v3329_v12, %v1788_v54 }
 0x340   : > { %v1824_v60 = vmax.f32 %v1808_v27, 0.0  ;;  %v1840_v17 = vmax.f32 %v1828_v52, %v1832_v63 }
 0x342   : > { %v1836_v23 = vmax.f32 %v1820_v25, %v1824_v60 }
 0x344   : > { %v1844_v46 = vmax.f32 %v1836_v23, %v1840_v17 }
 0x346   : > { %1849 = vst.msk [vmem:[%s3345_s16 + $0x18] sm:$0xff] %vm1845_vm2, %v1844_v46 }
 0x347   : > { %2212 = shalt.err (!%p2209_p0)
}
 0x348   : > { %s2323_s24 = smov 128   ;;  %s2324_s16 = smov 8  }
 0x349   : > { %2044 = dma.vmem_to_hbm [thread:$0]  (%p2501_p4), %s1866_s13, 512, %s1868_s7, %s1851_s11, %s2323_s24, %s2323_s24, %s2324_s16  }
 0x34a PF: > { %s3565_s20 = sld [smem:[#allocation13_spill]]  ;;  %p2050_p8 = scmp.ge.s32.totalorder %s2311_s15, 2 }
 0x34c   : > { %p2047_p2 = pnand %p2050_p8, %p2510_p9 }
 0x34e   : > { %p2048_p1 = pneg %p2047_p2 }
 0x350   : > { %s1882_s30 = sand.u32 1, %s3565_s20  }
 0x351   : > { %s1883_s25 = scalar_lea.sflag [#allocation4], %s1882_s30 }
 0x352   : > { %2266 = dma.done.wait (%p2048_p1), %s1883_s25, 512  }
 0x353   : > { %2268 = vsyncadd (%p2048_p1), %s1883_s25, 4294966784  ;;  %s27_s15 = sadd.s32 1, %s2311_s15   ;;  %s3567_s26 = sld [smem:[#allocation21_spill]] }
 0x354   : > { %p24_p3 = scmp.ge.s32.totalorder %s27_s15, 6   ;;  %s3568_s23 = sld [smem:[#allocation14_spill]] }
 0x355   : > { %s3569_s10 = sld [smem:[#allocation20_spill]]  ;;  %s3573_s27 = smov %s2275_s28 }
 0x356   : > { %s3570_s11 = sld [smem:[#allocation17_spill]]  ;;  %s3574_s28 = smov %s2279_s29 }
 0x357   : > { %s3571_s13 = sld [smem:[#allocation18_spill]]  ;;  %s3576_s30 = smov %s2287_s9 }
 0x358   : > { %s3572_s22 = sld [smem:[#allocation19_spill]]  ;;  %s3578_s12 = smov %s2307_s14 }
 0x359   : > { %s3575_s29 = smov %s3567_s26 }
 0x35a   : > { %s3577_s9 = smov %s3568_s23  ;;  %26 = sbr.rel (!%p24_p3) target bundleno = 16 (0x10), region = 115 }
 0x35e   : > { %s3579_s14 = smov %s3572_s22 }
 0x35f   :  { %1889 = vsyncpa [#allocation3], 1 }
 0x360   :  { %1891 = vsyncpa [#allocation3 + $0x1], 1 }
 0x361   :  { %1892 = vsyncpa [#allocation6], 1 }
 0x362   :  { %1894 = vsyncpa [#allocation6 + $0x1], 1 }
 0x363   :  { %1895 = vsyncpa [#allocation4], 1 }
 0x364   :  { %1897 = vsyncpa [#allocation4 + $0x1], 1 }

</bundles_post_ra>
